<compile_context>
chip_gen: v7x
topology: tpu7x:2x2x1
jax: 0.10.0
libtpu: 0.0.40
codegen_flags: <defaults>
</compile_context>

<pallas_src>
import jax
import jax.numpy as jnp
import numpy as np
from jax import lax
from jax.experimental import pallas as pl
from jax.experimental.pallas import tpu as pltpu


def _combo_stats_kernel(p_ref, t_ref, out_ref):
    B, H, W = p_ref.shape
    lane = lax.broadcasted_iota(jnp.int32, (1, 128), 1)
    rows = lax.broadcasted_iota(jnp.int32, (B, 1), 0)

    def rsum(x):
        # sublane (row) axis first with cheap VPU adds, then ONE cross-lane reduce.
        return jnp.sum(jnp.sum(x, axis=0, keepdims=True), axis=1, keepdims=True)

    def hcombos(x):
        # Horizontal Sobel combos (difference dh, smoothing sh) for the three
        # output-column regions: col 0 | cols 1..W-2 | col W-1.  The conv's zero
        # padding outside the image is folded into the boundary formulas.
        xl, xc, xr = x[:, 0:W - 2], x[:, 1:W - 1], x[:, 2:W]
        left = (-x[:, 1:2], 2.0 * x[:, 0:1] + x[:, 1:2])
        mid = (xl - xr, xl + 2.0 * xc + xr)
        right = (x[:, W - 2:W - 1], x[:, W - 2:W - 1] + 2.0 * x[:, W - 1:W])
        return (left, mid, right)

    def vcombos(d, s):
        # Vertical combos (gx, gy) for the three output-row regions.
        top = (2.0 * d[0:1] + d[1:2], -s[1:2])
        mid = (d[0:H - 2] + 2.0 * d[1:H - 1] + d[2:H], s[0:H - 2] - s[2:H])
        bot = (d[H - 2:H - 1] + 2.0 * d[H - 1:H], s[H - 2:H - 1])
        return (top, mid, bot)

    def sample_stats(b):
        p = p_ref[b].astype(jnp.float32)          # (H, W)
        t = t_ref[b].astype(jnp.float32)          # raw (un-normalized) target

        sum_p = rsum(p)
        sum_t = rsum(t)
        tp = rsum(p * t)
        t_max = jnp.max(jnp.max(t, axis=0, keepdims=True), axis=1, keepdims=True)

        log_p = jnp.maximum(jnp.log(p), -100.0)           # PyTorch BCE log clamp
        log_1p = jnp.maximum(jnp.log(1.0 - p), -100.0)
        s0 = rsum(log_1p)                                 # target-independent part
        s1 = rsum(t * (log_p - log_1p))                   # linear-in-target part

        # Sobel edge masks are exact 0/1 => clamped-log BCE == 100 * #mismatches.
        cnt = jnp.zeros((1, 1), jnp.float32)
        for (dp, sp), (dt, st) in zip(hcombos(p), hcombos(t)):
            for (gxp, gyp), (gxt, gyt) in zip(vcombos(dp, sp), vcombos(dt, st)):
                e_p = (gxp != 0.0) | (gyp != 0.0)
                e_t = (gxt != 0.0) | (gyt != 0.0)
                cnt = cnt + rsum(jnp.where(jnp.logical_xor(e_p, e_t), 1.0, 0.0))

        return (jnp.where(lane == 0, sum_p, 0.0)
                + jnp.where(lane == 1, sum_t, 0.0)
                + jnp.where(lane == 2, tp, 0.0)
                + jnp.where(lane == 3, s0, 0.0)
                + jnp.where(lane == 4, s1, 0.0)
                + jnp.where(lane == 5, cnt, 0.0)
                + jnp.where(lane == 6, t_max, 0.0))       # (1, 128)

    def body(b, acc):
        return jnp.where(rows == b, sample_stats(b), acc)

    out_ref[0] = lax.fori_loop(0, B, body, jnp.zeros((B, 128), jnp.float32))


def combo_loss(probs, target):
    """0.4*DiceBCE + 0.4*FocalTversky + 0.2*BCE(edge_mask(p), edge_mask(t))."""
    N, C, H, W = probs.shape
    assert C == 1, "edge_mask (1-channel Sobel conv) requires C == 1"
    assert H >= 3 and W >= 3
    p2 = probs.reshape(N, H, W)                  # metadata-only reshape
    t2 = target.reshape(N, H, W)                 # accepts (N,H,W) or (N,1,H,W); dtype kept

    # --- per-generation block sizing (v5e/v6e: 128 MiB VMEM, v7x: 64 MiB) ------
    try:
        phys_vmem = int(pltpu.get_tpu_info().vmem_capacity_bytes)
    except Exception:
        phys_vmem = 64 * 2**20                   # conservative (v7x per-core)
    vmem_target = min((phys_vmem * 3) // 4, 100 * 2**20)

    plane_f32 = H * W * 4
    bytes_in = H * W * (p2.dtype.itemsize + t2.dtype.itemsize)
    inter_bytes = 16 * plane_f32 + (2 << 20)     # per-sample fused intermediates + slack
    B = (vmem_target - inter_bytes) // (4 * bytes_in)   # 2 inputs x 2 pipeline buffers
    B = int(max(1, min(B, 256, -(-N // 2))))     # >=2 blocks when N>1 (v7x megacore)
    num_blocks = -(-N // B)
    vmem_limit = int(min((phys_vmem * 9) // 10,
                         max(32 * 2**20, 4 * B * bytes_in + inter_bytes + (4 << 20))))
    # TODO(synk): for very large planes (e.g. 1024x1024 on v7x's 64 MiB VMEM) the
    # single-sample intermediates no longer fit; row-chunk the per-sample loop
    # (1-row halo, partial-sum accumulators) before raising B.

    stats = pl.pallas_call(
        _combo_stats_kernel,
        out_shape=jax.ShapeDtypeStruct((num_blocks, B, 128), jnp.float32),
        grid=(num_blocks,),
        in_specs=[
            pl.BlockSpec((B, H, W), lambda i: (i, 0, 0)),
            pl.BlockSpec((B, H, W), lambda i: (i, 0, 0)),
        ],
        out_specs=pl.BlockSpec((1, B, 128), lambda i: (i, 0, 0)),
        compiler_params=pltpu.CompilerParams(
            dimension_semantics=("parallel",),
            vmem_limit_bytes=vmem_limit),
    )(p2, t2)

    stats = stats.reshape(num_blocks * B, 128)[:N]
    sum_p = stats[:, 0]
    sum_t_raw = stats[:, 1]
    tp_raw = stats[:, 2]
    s0 = stats[:, 3]
    s1 = stats[:, 4]
    edge_cnt = stats[:, 5]
    t_max = jnp.max(stats[:, 6])

    # `if target.max() > 1: target = target / 255` folded in post-hoc: every
    # target statistic is linear in target, the edge mask is scale-invariant.
    scale = jnp.where(t_max > 1.0, jnp.float32(1.0 / 255.0), jnp.float32(1.0))
    sum_t = scale * sum_t_raw
    tp = scale * tp_raw
    bce_sum = -(s0 + scale * s1)

    fp = sum_p - tp
    fn = sum_t - tp
    n_px = float(N * C * H * W)

    # DiceBCELoss (dice_w = 0.5)
    bce = jnp.sum(bce_sum) / n_px
    dice = 1.0 - (2.0 * tp + 1.0) / (sum_p + sum_t + 1.0)
    dice_bce = 0.5 * jnp.mean(dice) + 0.5 * bce

    # FocalTverskyLoss (a=0.3, b=0.7, g=0.75)
    tv = (tp + 1.0) / (tp + 0.3 * fp + 0.7 * fn + 1.0)
    ft = jnp.mean((1.0 - tv) ** 0.75)

    # Edge BCE: both masks are exact 0/1 -> per-pixel loss is 0 (match) or 100.
    edge_bce = 100.0 * jnp.sum(edge_cnt) / n_px

    return 0.4 * dice_bce + 0.4 * ft + 0.2 * edge_bce


# ---------------- pure-JAX reference (for correctness check) ----------------

def _edge_mask_ref(x):
    kx = jnp.array([[1., 0., -1.], [2., 0., -2.], [1., 0., -1.]],
                   jnp.float32).reshape(1, 1, 3, 3)
    ky = jnp.transpose(kx, (0, 1, 3, 2))
    dn = ('NCHW', 'OIHW', 'NCHW')
    gx = jax.lax.conv_general_dilated(x, kx, (1, 1), 'SAME',
                                      dimension_numbers=dn)
    gy = jax.lax.conv_general_dilated(x, ky, (1, 1), 'SAME',
                                      dimension_numbers=dn)
    return (jnp.sqrt(gx * gx + gy * gy) > 0.0).astype(jnp.float32)


def reference_combo_loss(probs, target):
    probs = probs.astype(jnp.float32)
    target = target.astype(jnp.float32)
    if target.ndim == 3:
        target = target[:, None, :, :]
    target = jnp.where(jnp.max(target) > 1.0, target / 255.0, target)
    p, t = probs, target

    def bce_mean(pp, tt):
        return -jnp.mean(tt * jnp.maximum(jnp.log(pp), -100.0)
                         + (1.0 - tt) * jnp.maximum(jnp.log(1.0 - pp), -100.0))

    bce = bce_mean(p, t)
    dice = 1.0 - (2.0 * jnp.sum(p * t, (2, 3)) + 1.0) / (jnp.sum(p + t, (2, 3)) + 1.0)
    dice_bce = 0.5 * jnp.mean(dice) + 0.5 * bce

    tp = jnp.sum(p * t, (2, 3))
    fp = jnp.sum((1.0 - t) * p, (2, 3))
    fn = jnp.sum(t * (1.0 - p), (2, 3))
    tv = (tp + 1.0) / (tp + 0.3 * fp + 0.7 * fn + 1.0)
    ft = jnp.mean((1.0 - tv) ** 0.75)

    e_gt = _edge_mask_ref(t)
    e_pr = _edge_mask_ref(p)
    edge_bce = bce_mean(e_pr, e_gt)

    return 0.4 * dice_bce + 0.4 * ft + 0.2 * edge_bce


if __name__ == "__main__":
    key = jax.random.PRNGKey(0)
    k1, k2 = jax.random.split(key)

    N, C, H, W = 2, 1, 16, 16
    probs = jax.random.uniform(k1, (N, C, H, W), jnp.float32,
                               minval=0.02, maxval=0.98)
    # binary mask given in 0/255 and in a NARROW dtype (bf16): exercises both the
    # in-kernel up-cast (halved target HBM traffic) and the /255 normalization.
    target = ((jax.random.uniform(k2, (N, C, H, W)) > 0.5)
              .astype(jnp.bfloat16) * jnp.bfloat16(255))

    out = jax.block_until_ready(combo_loss(probs, target))
    ref = jax.block_until_ready(reference_combo_loss(probs, target))

    np.testing.assert_allclose(np.asarray(out), np.asarray(ref),
                               rtol=1e-4, atol=1e-5)
    print("KERNEL_OK")
</pallas_src>

<mosaic_0001>
module attributes {stable_mosaic.version = 11 : i64} {
  func.func @_combo_stats_kernel(%arg0: i32, %arg1: memref<1x16x16xf32, #tpu.memory_space<vmem>>, %arg2: memref<1x16x16xbf16, #tpu.memory_space<vmem>>, %arg3: memref<1x1x128xf32, #tpu.memory_space<vmem>>) attributes {dimension_semantics = [#tpu.dimension_semantics<parallel>], iteration_bounds = array<i64: 2>, scalar_prefetch = 0 : i64, scratch_operands = 0 : i64, tpu.core_type = #tpu.core_type<tc>, window_params = [{transform_indices = @transform_0, window_bounds = array<i64: 1, 16, 16>}, {transform_indices = @transform_1, window_bounds = array<i64: 1, 16, 16>}, {transform_indices = @transform_2, window_bounds = array<i64: 1, 1, 128>}]} {
    %0 = tpu.iota {dimensions = array<i32: 1>} : vector<1x128xi32>
    %1 = tpu.iota {dimensions = array<i32: 0>} : vector<1x1xi32>
    %cst = arith.constant 0.000000e+00 : f32
    %2 = vector.broadcast %cst : f32 to vector<1x128xf32>
    %c0_i32 = arith.constant 0 : i32
    %3 = vector.broadcast %c0_i32 : i32 to vector<1x1xi32>
    %4 = arith.cmpi eq, %1, %3 : vector<1x1xi32>
    %5 = arith.index_cast %c0_i32 : i32 to index
    %c0 = arith.constant 0 : index
    %c0_0 = arith.constant 0 : index
    %6 = vector.load %arg1[%5, %c0, %c0_0] : memref<1x16x16xf32, #tpu.memory_space<vmem>>, vector<1x16x16xf32>
    %7 = vector.shape_cast %6 : vector<1x16x16xf32> to vector<16x16xf32>
    %8 = arith.index_cast %c0_i32 : i32 to index
    %c0_1 = arith.constant 0 : index
    %c0_2 = arith.constant 0 : index
    %9 = vector.load %arg2[%8, %c0_1, %c0_2] : memref<1x16x16xbf16, #tpu.memory_space<vmem>>, vector<1x16x16xbf16>
    %10 = vector.shape_cast %9 : vector<1x16x16xbf16> to vector<16x16xbf16>
    %11 = arith.extf %10 : vector<16x16xbf16> to vector<16x16xf32>
    %cst_3 = arith.constant dense<0.000000e+00> : vector<16xf32>
    %12 = vector.multi_reduction <add>, %7, %cst_3 [0] : vector<16x16xf32> to vector<16xf32>
    %13 = vector.shape_cast %12 : vector<16xf32> to vector<1x16xf32>
    %cst_4 = arith.constant dense<0.000000e+00> : vector<1xf32>
    %14 = vector.multi_reduction <add>, %13, %cst_4 [1] : vector<1x16xf32> to vector<1xf32>
    %15 = vector.shape_cast %14 : vector<1xf32> to vector<1x1xf32>
    %cst_5 = arith.constant dense<0.000000e+00> : vector<16xf32>
    %16 = vector.multi_reduction <add>, %11, %cst_5 [0] : vector<16x16xf32> to vector<16xf32>
    %17 = vector.shape_cast %16 : vector<16xf32> to vector<1x16xf32>
    %cst_6 = arith.constant dense<0.000000e+00> : vector<1xf32>
    %18 = vector.multi_reduction <add>, %17, %cst_6 [1] : vector<1x16xf32> to vector<1xf32>
    %19 = vector.shape_cast %18 : vector<1xf32> to vector<1x1xf32>
    %20 = arith.mulf %7, %11 : vector<16x16xf32>
    %cst_7 = arith.constant dense<0.000000e+00> : vector<16xf32>
    %21 = vector.multi_reduction <add>, %20, %cst_7 [0] : vector<16x16xf32> to vector<16xf32>
    %22 = vector.shape_cast %21 : vector<16xf32> to vector<1x16xf32>
    %cst_8 = arith.constant dense<0.000000e+00> : vector<1xf32>
    %23 = vector.multi_reduction <add>, %22, %cst_8 [1] : vector<1x16xf32> to vector<1xf32>
    %24 = vector.shape_cast %23 : vector<1xf32> to vector<1x1xf32>
    %cst_9 = arith.constant dense<0xFF800000> : vector<16xf32>
    %25 = vector.multi_reduction <maximumf>, %11, %cst_9 [0] : vector<16x16xf32> to vector<16xf32>
    %26 = vector.shape_cast %25 : vector<16xf32> to vector<1x16xf32>
    %cst_10 = arith.constant dense<0xFF800000> : vector<1xf32>
    %27 = vector.multi_reduction <maximumf>, %26, %cst_10 [1] : vector<1x16xf32> to vector<1xf32>
    %28 = vector.shape_cast %27 : vector<1xf32> to vector<1x1xf32>
    %29 = math.log %7 : vector<16x16xf32>
    %cst_11 = arith.constant -1.000000e+02 : f32
    %30 = vector.broadcast %cst_11 : f32 to vector<16x16xf32>
    %31 = arith.maximumf %29, %30 : vector<16x16xf32>
    %cst_12 = arith.constant 1.000000e+00 : f32
    %32 = vector.broadcast %cst_12 : f32 to vector<16x16xf32>
    %33 = arith.subf %32, %7 : vector<16x16xf32>
    %34 = math.log %33 : vector<16x16xf32>
    %cst_13 = arith.constant -1.000000e+02 : f32
    %35 = vector.broadcast %cst_13 : f32 to vector<16x16xf32>
    %36 = arith.maximumf %34, %35 : vector<16x16xf32>
    %cst_14 = arith.constant dense<0.000000e+00> : vector<16xf32>
    %37 = vector.multi_reduction <add>, %36, %cst_14 [0] : vector<16x16xf32> to vector<16xf32>
    %38 = vector.shape_cast %37 : vector<16xf32> to vector<1x16xf32>
    %cst_15 = arith.constant dense<0.000000e+00> : vector<1xf32>
    %39 = vector.multi_reduction <add>, %38, %cst_15 [1] : vector<1x16xf32> to vector<1xf32>
    %40 = vector.shape_cast %39 : vector<1xf32> to vector<1x1xf32>
    %41 = arith.subf %31, %36 : vector<16x16xf32>
    %42 = arith.mulf %11, %41 : vector<16x16xf32>
    %cst_16 = arith.constant dense<0.000000e+00> : vector<16xf32>
    %43 = vector.multi_reduction <add>, %42, %cst_16 [0] : vector<16x16xf32> to vector<16xf32>
    %44 = vector.shape_cast %43 : vector<16xf32> to vector<1x16xf32>
    %cst_17 = arith.constant dense<0.000000e+00> : vector<1xf32>
    %45 = vector.multi_reduction <add>, %44, %cst_17 [1] : vector<1x16xf32> to vector<1xf32>
    %46 = vector.shape_cast %45 : vector<1xf32> to vector<1x1xf32>
    %cst_18 = arith.constant 0.000000e+00 : f32
    %47 = vector.broadcast %cst_18 : f32 to vector<1x1xf32>
    %48 = vector.extract_strided_slice %7 {offsets = [0, 0], sizes = [16, 14], strides = [1, 1]} : vector<16x16xf32> to vector<16x14xf32>
    %49 = vector.extract_strided_slice %7 {offsets = [0, 1], sizes = [16, 14], strides = [1, 1]} : vector<16x16xf32> to vector<16x14xf32>
    %50 = vector.extract_strided_slice %7 {offsets = [0, 2], sizes = [16, 14], strides = [1, 1]} : vector<16x16xf32> to vector<16x14xf32>
    %51 = vector.extract_strided_slice %7 {offsets = [0, 1], sizes = [16, 1], strides = [1, 1]} : vector<16x16xf32> to vector<16x1xf32>
    %cst_19 = arith.constant 0.000000e+00 : f32
    %52 = vector.broadcast %cst_19 : f32 to vector<16x1xf32>
    %53 = arith.subf %52, %51 : vector<16x1xf32>
    %54 = vector.extract_strided_slice %7 {offsets = [0, 0], sizes = [16, 1], strides = [1, 1]} : vector<16x16xf32> to vector<16x1xf32>
    %cst_20 = arith.constant 2.000000e+00 : f32
    %55 = vector.broadcast %cst_20 : f32 to vector<16x1xf32>
    %56 = arith.mulf %55, %54 : vector<16x1xf32>
    %57 = vector.extract_strided_slice %7 {offsets = [0, 1], sizes = [16, 1], strides = [1, 1]} : vector<16x16xf32> to vector<16x1xf32>
    %58 = arith.addf %56, %57 : vector<16x1xf32>
    %59 = arith.subf %48, %50 : vector<16x14xf32>
    %cst_21 = arith.constant 2.000000e+00 : f32
    %60 = vector.broadcast %cst_21 : f32 to vector<16x14xf32>
    %61 = arith.mulf %60, %49 : vector<16x14xf32>
    %62 = arith.addf %48, %61 : vector<16x14xf32>
    %63 = arith.addf %62, %50 : vector<16x14xf32>
    %64 = vector.extract_strided_slice %7 {offsets = [0, 14], sizes = [16, 1], strides = [1, 1]} : vector<16x16xf32> to vector<16x1xf32>
    %65 = vector.extract_strided_slice %7 {offsets = [0, 14], sizes = [16, 1], strides = [1, 1]} : vector<16x16xf32> to vector<16x1xf32>
    %66 = vector.extract_strided_slice %7 {offsets = [0, 15], sizes = [16, 1], strides = [1, 1]} : vector<16x16xf32> to vector<16x1xf32>
    %cst_22 = arith.constant 2.000000e+00 : f32
    %67 = vector.broadcast %cst_22 : f32 to vector<16x1xf32>
    %68 = arith.mulf %67, %66 : vector<16x1xf32>
    %69 = arith.addf %65, %68 : vector<16x1xf32>
    %70 = vector.extract_strided_slice %11 {offsets = [0, 0], sizes = [16, 14], strides = [1, 1]} : vector<16x16xf32> to vector<16x14xf32>
    %71 = vector.extract_strided_slice %11 {offsets = [0, 1], sizes = [16, 14], strides = [1, 1]} : vector<16x16xf32> to vector<16x14xf32>
    %72 = vector.extract_strided_slice %11 {offsets = [0, 2], sizes = [16, 14], strides = [1, 1]} : vector<16x16xf32> to vector<16x14xf32>
    %73 = vector.extract_strided_slice %11 {offsets = [0, 1], sizes = [16, 1], strides = [1, 1]} : vector<16x16xf32> to vector<16x1xf32>
    %cst_23 = arith.constant 0.000000e+00 : f32
    %74 = vector.broadcast %cst_23 : f32 to vector<16x1xf32>
    %75 = arith.subf %74, %73 : vector<16x1xf32>
    %76 = vector.extract_strided_slice %11 {offsets = [0, 0], sizes = [16, 1], strides = [1, 1]} : vector<16x16xf32> to vector<16x1xf32>
    %cst_24 = arith.constant 2.000000e+00 : f32
    %77 = vector.broadcast %cst_24 : f32 to vector<16x1xf32>
    %78 = arith.mulf %77, %76 : vector<16x1xf32>
    %79 = vector.extract_strided_slice %11 {offsets = [0, 1], sizes = [16, 1], strides = [1, 1]} : vector<16x16xf32> to vector<16x1xf32>
    %80 = arith.addf %78, %79 : vector<16x1xf32>
    %81 = arith.subf %70, %72 : vector<16x14xf32>
    %cst_25 = arith.constant 2.000000e+00 : f32
    %82 = vector.broadcast %cst_25 : f32 to vector<16x14xf32>
    %83 = arith.mulf %82, %71 : vector<16x14xf32>
    %84 = arith.addf %70, %83 : vector<16x14xf32>
    %85 = arith.addf %84, %72 : vector<16x14xf32>
    %86 = vector.extract_strided_slice %11 {offsets = [0, 14], sizes = [16, 1], strides = [1, 1]} : vector<16x16xf32> to vector<16x1xf32>
    %87 = vector.extract_strided_slice %11 {offsets = [0, 14], sizes = [16, 1], strides = [1, 1]} : vector<16x16xf32> to vector<16x1xf32>
    %88 = vector.extract_strided_slice %11 {offsets = [0, 15], sizes = [16, 1], strides = [1, 1]} : vector<16x16xf32> to vector<16x1xf32>
    %cst_26 = arith.constant 2.000000e+00 : f32
    %89 = vector.broadcast %cst_26 : f32 to vector<16x1xf32>
    %90 = arith.mulf %89, %88 : vector<16x1xf32>
    %91 = arith.addf %87, %90 : vector<16x1xf32>
    %92 = vector.extract_strided_slice %53 {offsets = [0, 0], sizes = [1, 1], strides = [1, 1]} : vector<16x1xf32> to vector<1x1xf32>
    %cst_27 = arith.constant 2.000000e+00 : f32
    %93 = vector.broadcast %cst_27 : f32 to vector<1x1xf32>
    %94 = arith.mulf %93, %92 : vector<1x1xf32>
    %95 = vector.extract_strided_slice %53 {offsets = [1, 0], sizes = [1, 1], strides = [1, 1]} : vector<16x1xf32> to vector<1x1xf32>
    %96 = arith.addf %94, %95 : vector<1x1xf32>
    %97 = vector.extract_strided_slice %58 {offsets = [1, 0], sizes = [1, 1], strides = [1, 1]} : vector<16x1xf32> to vector<1x1xf32>
    %cst_28 = arith.constant 0.000000e+00 : f32
    %98 = vector.broadcast %cst_28 : f32 to vector<1x1xf32>
    %99 = arith.subf %98, %97 : vector<1x1xf32>
    %100 = vector.extract_strided_slice %53 {offsets = [0, 0], sizes = [14, 1], strides = [1, 1]} : vector<16x1xf32> to vector<14x1xf32>
    %101 = vector.extract_strided_slice %53 {offsets = [1, 0], sizes = [14, 1], strides = [1, 1]} : vector<16x1xf32> to vector<14x1xf32>
    %cst_29 = arith.constant 2.000000e+00 : f32
    %102 = vector.broadcast %cst_29 : f32 to vector<14x1xf32>
    %103 = arith.mulf %102, %101 : vector<14x1xf32>
    %104 = arith.addf %100, %103 : vector<14x1xf32>
    %105 = vector.extract_strided_slice %53 {offsets = [2, 0], sizes = [14, 1], strides = [1, 1]} : vector<16x1xf32> to vector<14x1xf32>
    %106 = arith.addf %104, %105 : vector<14x1xf32>
    %107 = vector.extract_strided_slice %58 {offsets = [0, 0], sizes = [14, 1], strides = [1, 1]} : vector<16x1xf32> to vector<14x1xf32>
    %108 = vector.extract_strided_slice %58 {offsets = [2, 0], sizes = [14, 1], strides = [1, 1]} : vector<16x1xf32> to vector<14x1xf32>
    %109 = arith.subf %107, %108 : vector<14x1xf32>
    %110 = vector.extract_strided_slice %53 {offsets = [14, 0], sizes = [1, 1], strides = [1, 1]} : vector<16x1xf32> to vector<1x1xf32>
    %111 = vector.extract_strided_slice %53 {offsets = [15, 0], sizes = [1, 1], strides = [1, 1]} : vector<16x1xf32> to vector<1x1xf32>
    %cst_30 = arith.constant 2.000000e+00 : f32
    %112 = vector.broadcast %cst_30 : f32 to vector<1x1xf32>
    %113 = arith.mulf %112, %111 : vector<1x1xf32>
    %114 = arith.addf %110, %113 : vector<1x1xf32>
    %115 = vector.extract_strided_slice %58 {offsets = [14, 0], sizes = [1, 1], strides = [1, 1]} : vector<16x1xf32> to vector<1x1xf32>
    %116 = vector.extract_strided_slice %75 {offsets = [0, 0], sizes = [1, 1], strides = [1, 1]} : vector<16x1xf32> to vector<1x1xf32>
    %cst_31 = arith.constant 2.000000e+00 : f32
    %117 = vector.broadcast %cst_31 : f32 to vector<1x1xf32>
    %118 = arith.mulf %117, %116 : vector<1x1xf32>
    %119 = vector.extract_strided_slice %75 {offsets = [1, 0], sizes = [1, 1], strides = [1, 1]} : vector<16x1xf32> to vector<1x1xf32>
    %120 = arith.addf %118, %119 : vector<1x1xf32>
    %121 = vector.extract_strided_slice %80 {offsets = [1, 0], sizes = [1, 1], strides = [1, 1]} : vector<16x1xf32> to vector<1x1xf32>
    %cst_32 = arith.constant 0.000000e+00 : f32
    %122 = vector.broadcast %cst_32 : f32 to vector<1x1xf32>
    %123 = arith.subf %122, %121 : vector<1x1xf32>
    %124 = vector.extract_strided_slice %75 {offsets = [0, 0], sizes = [14, 1], strides = [1, 1]} : vector<16x1xf32> to vector<14x1xf32>
    %125 = vector.extract_strided_slice %75 {offsets = [1, 0], sizes = [14, 1], strides = [1, 1]} : vector<16x1xf32> to vector<14x1xf32>
    %cst_33 = arith.constant 2.000000e+00 : f32
    %126 = vector.broadcast %cst_33 : f32 to vector<14x1xf32>
    %127 = arith.mulf %126, %125 : vector<14x1xf32>
    %128 = arith.addf %124, %127 : vector<14x1xf32>
    %129 = vector.extract_strided_slice %75 {offsets = [2, 0], sizes = [14, 1], strides = [1, 1]} : vector<16x1xf32> to vector<14x1xf32>
    %130 = arith.addf %128, %129 : vector<14x1xf32>
    %131 = vector.extract_strided_slice %80 {offsets = [0, 0], sizes = [14, 1], strides = [1, 1]} : vector<16x1xf32> to vector<14x1xf32>
    %132 = vector.extract_strided_slice %80 {offsets = [2, 0], sizes = [14, 1], strides = [1, 1]} : vector<16x1xf32> to vector<14x1xf32>
    %133 = arith.subf %131, %132 : vector<14x1xf32>
    %134 = vector.extract_strided_slice %75 {offsets = [14, 0], sizes = [1, 1], strides = [1, 1]} : vector<16x1xf32> to vector<1x1xf32>
    %135 = vector.extract_strided_slice %75 {offsets = [15, 0], sizes = [1, 1], strides = [1, 1]} : vector<16x1xf32> to vector<1x1xf32>
    %cst_34 = arith.constant 2.000000e+00 : f32
    %136 = vector.broadcast %cst_34 : f32 to vector<1x1xf32>
    %137 = arith.mulf %136, %135 : vector<1x1xf32>
    %138 = arith.addf %134, %137 : vector<1x1xf32>
    %139 = vector.extract_strided_slice %80 {offsets = [14, 0], sizes = [1, 1], strides = [1, 1]} : vector<16x1xf32> to vector<1x1xf32>
    %cst_35 = arith.constant 0.000000e+00 : f32
    %140 = vector.broadcast %cst_35 : f32 to vector<1x1xf32>
    %141 = arith.cmpf one, %96, %140 : vector<1x1xf32>
    %cst_36 = arith.constant 0.000000e+00 : f32
    %142 = vector.broadcast %cst_36 : f32 to vector<1x1xf32>
    %143 = arith.cmpf one, %99, %142 : vector<1x1xf32>
    %144 = arith.ori %141, %143 : vector<1x1xi1>
    %cst_37 = arith.constant 0.000000e+00 : f32
    %145 = vector.broadcast %cst_37 : f32 to vector<1x1xf32>
    %146 = arith.cmpf one, %120, %145 : vector<1x1xf32>
    %cst_38 = arith.constant 0.000000e+00 : f32
    %147 = vector.broadcast %cst_38 : f32 to vector<1x1xf32>
    %148 = arith.cmpf one, %123, %147 : vector<1x1xf32>
    %149 = arith.ori %146, %148 : vector<1x1xi1>
    %150 = arith.xori %144, %149 : vector<1x1xi1>
    %cst_39 = arith.constant 1.000000e+00 : f32
    %cst_40 = arith.constant 0.000000e+00 : f32
    %151 = vector.broadcast %cst_39 : f32 to vector<1x1xf32>
    %152 = vector.broadcast %cst_40 : f32 to vector<1x1xf32>
    %153 = arith.select %150, %151, %152 : vector<1x1xi1>, vector<1x1xf32>
    %cst_41 = arith.constant dense<0.000000e+00> : vector<1xf32>
    %154 = vector.multi_reduction <add>, %153, %cst_41 [0] : vector<1x1xf32> to vector<1xf32>
    %155 = vector.shape_cast %154 : vector<1xf32> to vector<1x1xf32>
    %cst_42 = arith.constant dense<0.000000e+00> : vector<1xf32>
    %156 = vector.multi_reduction <add>, %155, %cst_42 [1] : vector<1x1xf32> to vector<1xf32>
    %157 = vector.shape_cast %156 : vector<1xf32> to vector<1x1xf32>
    %158 = arith.addf %47, %157 : vector<1x1xf32>
    %cst_43 = arith.constant 0.000000e+00 : f32
    %159 = vector.broadcast %cst_43 : f32 to vector<14x1xf32>
    %160 = arith.cmpf one, %106, %159 : vector<14x1xf32>
    %cst_44 = arith.constant 0.000000e+00 : f32
    %161 = vector.broadcast %cst_44 : f32 to vector<14x1xf32>
    %162 = arith.cmpf one, %109, %161 : vector<14x1xf32>
    %163 = arith.ori %160, %162 : vector<14x1xi1>
    %cst_45 = arith.constant 0.000000e+00 : f32
    %164 = vector.broadcast %cst_45 : f32 to vector<14x1xf32>
    %165 = arith.cmpf one, %130, %164 : vector<14x1xf32>
    %cst_46 = arith.constant 0.000000e+00 : f32
    %166 = vector.broadcast %cst_46 : f32 to vector<14x1xf32>
    %167 = arith.cmpf one, %133, %166 : vector<14x1xf32>
    %168 = arith.ori %165, %167 : vector<14x1xi1>
    %169 = arith.xori %163, %168 : vector<14x1xi1>
    %cst_47 = arith.constant 1.000000e+00 : f32
    %cst_48 = arith.constant 0.000000e+00 : f32
    %170 = vector.broadcast %cst_47 : f32 to vector<14x1xf32>
    %171 = vector.broadcast %cst_48 : f32 to vector<14x1xf32>
    %172 = arith.select %169, %170, %171 : vector<14x1xi1>, vector<14x1xf32>
    %cst_49 = arith.constant dense<0.000000e+00> : vector<1xf32>
    %173 = vector.multi_reduction <add>, %172, %cst_49 [0] : vector<14x1xf32> to vector<1xf32>
    %174 = vector.shape_cast %173 : vector<1xf32> to vector<1x1xf32>
    %cst_50 = arith.constant dense<0.000000e+00> : vector<1xf32>
    %175 = vector.multi_reduction <add>, %174, %cst_50 [1] : vector<1x1xf32> to vector<1xf32>
    %176 = vector.shape_cast %175 : vector<1xf32> to vector<1x1xf32>
    %177 = arith.addf %158, %176 : vector<1x1xf32>
    %cst_51 = arith.constant 0.000000e+00 : f32
    %178 = vector.broadcast %cst_51 : f32 to vector<1x1xf32>
    %179 = arith.cmpf one, %114, %178 : vector<1x1xf32>
    %cst_52 = arith.constant 0.000000e+00 : f32
    %180 = vector.broadcast %cst_52 : f32 to vector<1x1xf32>
    %181 = arith.cmpf one, %115, %180 : vector<1x1xf32>
    %182 = arith.ori %179, %181 : vector<1x1xi1>
    %cst_53 = arith.constant 0.000000e+00 : f32
    %183 = vector.broadcast %cst_53 : f32 to vector<1x1xf32>
    %184 = arith.cmpf one, %138, %183 : vector<1x1xf32>
    %cst_54 = arith.constant 0.000000e+00 : f32
    %185 = vector.broadcast %cst_54 : f32 to vector<1x1xf32>
    %186 = arith.cmpf one, %139, %185 : vector<1x1xf32>
    %187 = arith.ori %184, %186 : vector<1x1xi1>
    %188 = arith.xori %182, %187 : vector<1x1xi1>
    %cst_55 = arith.constant 1.000000e+00 : f32
    %cst_56 = arith.constant 0.000000e+00 : f32
    %189 = vector.broadcast %cst_55 : f32 to vector<1x1xf32>
    %190 = vector.broadcast %cst_56 : f32 to vector<1x1xf32>
    %191 = arith.select %188, %189, %190 : vector<1x1xi1>, vector<1x1xf32>
    %cst_57 = arith.constant dense<0.000000e+00> : vector<1xf32>
    %192 = vector.multi_reduction <add>, %191, %cst_57 [0] : vector<1x1xf32> to vector<1xf32>
    %193 = vector.shape_cast %192 : vector<1xf32> to vector<1x1xf32>
    %cst_58 = arith.constant dense<0.000000e+00> : vector<1xf32>
    %194 = vector.multi_reduction <add>, %193, %cst_58 [1] : vector<1x1xf32> to vector<1xf32>
    %195 = vector.shape_cast %194 : vector<1xf32> to vector<1x1xf32>
    %196 = arith.addf %177, %195 : vector<1x1xf32>
    %197 = vector.extract_strided_slice %59 {offsets = [0, 0], sizes = [1, 14], strides = [1, 1]} : vector<16x14xf32> to vector<1x14xf32>
    %cst_59 = arith.constant 2.000000e+00 : f32
    %198 = vector.broadcast %cst_59 : f32 to vector<1x14xf32>
    %199 = arith.mulf %198, %197 : vector<1x14xf32>
    %200 = vector.extract_strided_slice %59 {offsets = [1, 0], sizes = [1, 14], strides = [1, 1]} : vector<16x14xf32> to vector<1x14xf32>
    %201 = arith.addf %199, %200 : vector<1x14xf32>
    %202 = vector.extract_strided_slice %63 {offsets = [1, 0], sizes = [1, 14], strides = [1, 1]} : vector<16x14xf32> to vector<1x14xf32>
    %cst_60 = arith.constant 0.000000e+00 : f32
    %203 = vector.broadcast %cst_60 : f32 to vector<1x14xf32>
    %204 = arith.subf %203, %202 : vector<1x14xf32>
    %205 = vector.extract_strided_slice %59 {offsets = [0, 0], sizes = [14, 14], strides = [1, 1]} : vector<16x14xf32> to vector<14x14xf32>
    %206 = vector.extract_strided_slice %59 {offsets = [1, 0], sizes = [14, 14], strides = [1, 1]} : vector<16x14xf32> to vector<14x14xf32>
    %cst_61 = arith.constant 2.000000e+00 : f32
    %207 = vector.broadcast %cst_61 : f32 to vector<14x14xf32>
    %208 = arith.mulf %207, %206 : vector<14x14xf32>
    %209 = arith.addf %205, %208 : vector<14x14xf32>
    %210 = vector.extract_strided_slice %59 {offsets = [2, 0], sizes = [14, 14], strides = [1, 1]} : vector<16x14xf32> to vector<14x14xf32>
    %211 = arith.addf %209, %210 : vector<14x14xf32>
    %212 = vector.extract_strided_slice %63 {offsets = [0, 0], sizes = [14, 14], strides = [1, 1]} : vector<16x14xf32> to vector<14x14xf32>
    %213 = vector.extract_strided_slice %63 {offsets = [2, 0], sizes = [14, 14], strides = [1, 1]} : vector<16x14xf32> to vector<14x14xf32>
    %214 = arith.subf %212, %213 : vector<14x14xf32>
    %215 = vector.extract_strided_slice %59 {offsets = [14, 0], sizes = [1, 14], strides = [1, 1]} : vector<16x14xf32> to vector<1x14xf32>
    %216 = vector.extract_strided_slice %59 {offsets = [15, 0], sizes = [1, 14], strides = [1, 1]} : vector<16x14xf32> to vector<1x14xf32>
    %cst_62 = arith.constant 2.000000e+00 : f32
    %217 = vector.broadcast %cst_62 : f32 to vector<1x14xf32>
    %218 = arith.mulf %217, %216 : vector<1x14xf32>
    %219 = arith.addf %215, %218 : vector<1x14xf32>
    %220 = vector.extract_strided_slice %63 {offsets = [14, 0], sizes = [1, 14], strides = [1, 1]} : vector<16x14xf32> to vector<1x14xf32>
    %221 = vector.extract_strided_slice %81 {offsets = [0, 0], sizes = [1, 14], strides = [1, 1]} : vector<16x14xf32> to vector<1x14xf32>
    %cst_63 = arith.constant 2.000000e+00 : f32
    %222 = vector.broadcast %cst_63 : f32 to vector<1x14xf32>
    %223 = arith.mulf %222, %221 : vector<1x14xf32>
    %224 = vector.extract_strided_slice %81 {offsets = [1, 0], sizes = [1, 14], strides = [1, 1]} : vector<16x14xf32> to vector<1x14xf32>
    %225 = arith.addf %223, %224 : vector<1x14xf32>
    %226 = vector.extract_strided_slice %85 {offsets = [1, 0], sizes = [1, 14], strides = [1, 1]} : vector<16x14xf32> to vector<1x14xf32>
    %cst_64 = arith.constant 0.000000e+00 : f32
    %227 = vector.broadcast %cst_64 : f32 to vector<1x14xf32>
    %228 = arith.subf %227, %226 : vector<1x14xf32>
    %229 = vector.extract_strided_slice %81 {offsets = [0, 0], sizes = [14, 14], strides = [1, 1]} : vector<16x14xf32> to vector<14x14xf32>
    %230 = vector.extract_strided_slice %81 {offsets = [1, 0], sizes = [14, 14], strides = [1, 1]} : vector<16x14xf32> to vector<14x14xf32>
    %cst_65 = arith.constant 2.000000e+00 : f32
    %231 = vector.broadcast %cst_65 : f32 to vector<14x14xf32>
    %232 = arith.mulf %231, %230 : vector<14x14xf32>
    %233 = arith.addf %229, %232 : vector<14x14xf32>
    %234 = vector.extract_strided_slice %81 {offsets = [2, 0], sizes = [14, 14], strides = [1, 1]} : vector<16x14xf32> to vector<14x14xf32>
    %235 = arith.addf %233, %234 : vector<14x14xf32>
    %236 = vector.extract_strided_slice %85 {offsets = [0, 0], sizes = [14, 14], strides = [1, 1]} : vector<16x14xf32> to vector<14x14xf32>
    %237 = vector.extract_strided_slice %85 {offsets = [2, 0], sizes = [14, 14], strides = [1, 1]} : vector<16x14xf32> to vector<14x14xf32>
    %238 = arith.subf %236, %237 : vector<14x14xf32>
    %239 = vector.extract_strided_slice %81 {offsets = [14, 0], sizes = [1, 14], strides = [1, 1]} : vector<16x14xf32> to vector<1x14xf32>
    %240 = vector.extract_strided_slice %81 {offsets = [15, 0], sizes = [1, 14], strides = [1, 1]} : vector<16x14xf32> to vector<1x14xf32>
    %cst_66 = arith.constant 2.000000e+00 : f32
    %241 = vector.broadcast %cst_66 : f32 to vector<1x14xf32>
    %242 = arith.mulf %241, %240 : vector<1x14xf32>
    %243 = arith.addf %239, %242 : vector<1x14xf32>
    %244 = vector.extract_strided_slice %85 {offsets = [14, 0], sizes = [1, 14], strides = [1, 1]} : vector<16x14xf32> to vector<1x14xf32>
    %cst_67 = arith.constant 0.000000e+00 : f32
    %245 = vector.broadcast %cst_67 : f32 to vector<1x14xf32>
    %246 = arith.cmpf one, %201, %245 : vector<1x14xf32>
    %cst_68 = arith.constant 0.000000e+00 : f32
    %247 = vector.broadcast %cst_68 : f32 to vector<1x14xf32>
    %248 = arith.cmpf one, %204, %247 : vector<1x14xf32>
    %249 = arith.ori %246, %248 : vector<1x14xi1>
    %cst_69 = arith.constant 0.000000e+00 : f32
    %250 = vector.broadcast %cst_69 : f32 to vector<1x14xf32>
    %251 = arith.cmpf one, %225, %250 : vector<1x14xf32>
    %cst_70 = arith.constant 0.000000e+00 : f32
    %252 = vector.broadcast %cst_70 : f32 to vector<1x14xf32>
    %253 = arith.cmpf one, %228, %252 : vector<1x14xf32>
    %254 = arith.ori %251, %253 : vector<1x14xi1>
    %255 = arith.xori %249, %254 : vector<1x14xi1>
    %cst_71 = arith.constant 1.000000e+00 : f32
    %cst_72 = arith.constant 0.000000e+00 : f32
    %256 = vector.broadcast %cst_71 : f32 to vector<1x14xf32>
    %257 = vector.broadcast %cst_72 : f32 to vector<1x14xf32>
    %258 = arith.select %255, %256, %257 : vector<1x14xi1>, vector<1x14xf32>
    %cst_73 = arith.constant dense<0.000000e+00> : vector<14xf32>
    %259 = vector.multi_reduction <add>, %258, %cst_73 [0] : vector<1x14xf32> to vector<14xf32>
    %260 = vector.shape_cast %259 : vector<14xf32> to vector<1x14xf32>
    %cst_74 = arith.constant dense<0.000000e+00> : vector<1xf32>
    %261 = vector.multi_reduction <add>, %260, %cst_74 [1] : vector<1x14xf32> to vector<1xf32>
    %262 = vector.shape_cast %261 : vector<1xf32> to vector<1x1xf32>
    %263 = arith.addf %196, %262 : vector<1x1xf32>
    %cst_75 = arith.constant 0.000000e+00 : f32
    %264 = vector.broadcast %cst_75 : f32 to vector<14x14xf32>
    %265 = arith.cmpf one, %211, %264 : vector<14x14xf32>
    %cst_76 = arith.constant 0.000000e+00 : f32
    %266 = vector.broadcast %cst_76 : f32 to vector<14x14xf32>
    %267 = arith.cmpf one, %214, %266 : vector<14x14xf32>
    %268 = arith.ori %265, %267 : vector<14x14xi1>
    %cst_77 = arith.constant 0.000000e+00 : f32
    %269 = vector.broadcast %cst_77 : f32 to vector<14x14xf32>
    %270 = arith.cmpf one, %235, %269 : vector<14x14xf32>
    %cst_78 = arith.constant 0.000000e+00 : f32
    %271 = vector.broadcast %cst_78 : f32 to vector<14x14xf32>
    %272 = arith.cmpf one, %238, %271 : vector<14x14xf32>
    %273 = arith.ori %270, %272 : vector<14x14xi1>
    %274 = arith.xori %268, %273 : vector<14x14xi1>
    %cst_79 = arith.constant 1.000000e+00 : f32
    %cst_80 = arith.constant 0.000000e+00 : f32
    %275 = vector.broadcast %cst_79 : f32 to vector<14x14xf32>
    %276 = vector.broadcast %cst_80 : f32 to vector<14x14xf32>
    %277 = arith.select %274, %275, %276 : vector<14x14xi1>, vector<14x14xf32>
    %cst_81 = arith.constant dense<0.000000e+00> : vector<14xf32>
    %278 = vector.multi_reduction <add>, %277, %cst_81 [0] : vector<14x14xf32> to vector<14xf32>
    %279 = vector.shape_cast %278 : vector<14xf32> to vector<1x14xf32>
    %cst_82 = arith.constant dense<0.000000e+00> : vector<1xf32>
    %280 = vector.multi_reduction <add>, %279, %cst_82 [1] : vector<1x14xf32> to vector<1xf32>
    %281 = vector.shape_cast %280 : vector<1xf32> to vector<1x1xf32>
    %282 = arith.addf %263, %281 : vector<1x1xf32>
    %cst_83 = arith.constant 0.000000e+00 : f32
    %283 = vector.broadcast %cst_83 : f32 to vector<1x14xf32>
    %284 = arith.cmpf one, %219, %283 : vector<1x14xf32>
    %cst_84 = arith.constant 0.000000e+00 : f32
    %285 = vector.broadcast %cst_84 : f32 to vector<1x14xf32>
    %286 = arith.cmpf one, %220, %285 : vector<1x14xf32>
    %287 = arith.ori %284, %286 : vector<1x14xi1>
    %cst_85 = arith.constant 0.000000e+00 : f32
    %288 = vector.broadcast %cst_85 : f32 to vector<1x14xf32>
    %289 = arith.cmpf one, %243, %288 : vector<1x14xf32>
    %cst_86 = arith.constant 0.000000e+00 : f32
    %290 = vector.broadcast %cst_86 : f32 to vector<1x14xf32>
    %291 = arith.cmpf one, %244, %290 : vector<1x14xf32>
    %292 = arith.ori %289, %291 : vector<1x14xi1>
    %293 = arith.xori %287, %292 : vector<1x14xi1>
    %cst_87 = arith.constant 1.000000e+00 : f32
    %cst_88 = arith.constant 0.000000e+00 : f32
    %294 = vector.broadcast %cst_87 : f32 to vector<1x14xf32>
    %295 = vector.broadcast %cst_88 : f32 to vector<1x14xf32>
    %296 = arith.select %293, %294, %295 : vector<1x14xi1>, vector<1x14xf32>
    %cst_89 = arith.constant dense<0.000000e+00> : vector<14xf32>
    %297 = vector.multi_reduction <add>, %296, %cst_89 [0] : vector<1x14xf32> to vector<14xf32>
    %298 = vector.shape_cast %297 : vector<14xf32> to vector<1x14xf32>
    %cst_90 = arith.constant dense<0.000000e+00> : vector<1xf32>
    %299 = vector.multi_reduction <add>, %298, %cst_90 [1] : vector<1x14xf32> to vector<1xf32>
    %300 = vector.shape_cast %299 : vector<1xf32> to vector<1x1xf32>
    %301 = arith.addf %282, %300 : vector<1x1xf32>
    %302 = vector.extract_strided_slice %64 {offsets = [0, 0], sizes = [1, 1], strides = [1, 1]} : vector<16x1xf32> to vector<1x1xf32>
    %cst_91 = arith.constant 2.000000e+00 : f32
    %303 = vector.broadcast %cst_91 : f32 to vector<1x1xf32>
    %304 = arith.mulf %303, %302 : vector<1x1xf32>
    %305 = vector.extract_strided_slice %64 {offsets = [1, 0], sizes = [1, 1], strides = [1, 1]} : vector<16x1xf32> to vector<1x1xf32>
    %306 = arith.addf %304, %305 : vector<1x1xf32>
    %307 = vector.extract_strided_slice %69 {offsets = [1, 0], sizes = [1, 1], strides = [1, 1]} : vector<16x1xf32> to vector<1x1xf32>
    %cst_92 = arith.constant 0.000000e+00 : f32
    %308 = vector.broadcast %cst_92 : f32 to vector<1x1xf32>
    %309 = arith.subf %308, %307 : vector<1x1xf32>
    %310 = vector.extract_strided_slice %64 {offsets = [0, 0], sizes = [14, 1], strides = [1, 1]} : vector<16x1xf32> to vector<14x1xf32>
    %311 = vector.extract_strided_slice %64 {offsets = [1, 0], sizes = [14, 1], strides = [1, 1]} : vector<16x1xf32> to vector<14x1xf32>
    %cst_93 = arith.constant 2.000000e+00 : f32
    %312 = vector.broadcast %cst_93 : f32 to vector<14x1xf32>
    %313 = arith.mulf %312, %311 : vector<14x1xf32>
    %314 = arith.addf %310, %313 : vector<14x1xf32>
    %315 = vector.extract_strided_slice %64 {offsets = [2, 0], sizes = [14, 1], strides = [1, 1]} : vector<16x1xf32> to vector<14x1xf32>
    %316 = arith.addf %314, %315 : vector<14x1xf32>
    %317 = vector.extract_strided_slice %69 {offsets = [0, 0], sizes = [14, 1], strides = [1, 1]} : vector<16x1xf32> to vector<14x1xf32>
    %318 = vector.extract_strided_slice %69 {offsets = [2, 0], sizes = [14, 1], strides = [1, 1]} : vector<16x1xf32> to vector<14x1xf32>
    %319 = arith.subf %317, %318 : vector<14x1xf32>
    %320 = vector.extract_strided_slice %64 {offsets = [14, 0], sizes = [1, 1], strides = [1, 1]} : vector<16x1xf32> to vector<1x1xf32>
    %321 = vector.extract_strided_slice %64 {offsets = [15, 0], sizes = [1, 1], strides = [1, 1]} : vector<16x1xf32> to vector<1x1xf32>
    %cst_94 = arith.constant 2.000000e+00 : f32
    %322 = vector.broadcast %cst_94 : f32 to vector<1x1xf32>
    %323 = arith.mulf %322, %321 : vector<1x1xf32>
    %324 = arith.addf %320, %323 : vector<1x1xf32>
    %325 = vector.extract_strided_slice %69 {offsets = [14, 0], sizes = [1, 1], strides = [1, 1]} : vector<16x1xf32> to vector<1x1xf32>
    %326 = vector.extract_strided_slice %86 {offsets = [0, 0], sizes = [1, 1], strides = [1, 1]} : vector<16x1xf32> to vector<1x1xf32>
    %cst_95 = arith.constant 2.000000e+00 : f32
    %327 = vector.broadcast %cst_95 : f32 to vector<1x1xf32>
    %328 = arith.mulf %327, %326 : vector<1x1xf32>
    %329 = vector.extract_strided_slice %86 {offsets = [1, 0], sizes = [1, 1], strides = [1, 1]} : vector<16x1xf32> to vector<1x1xf32>
    %330 = arith.addf %328, %329 : vector<1x1xf32>
    %331 = vector.extract_strided_slice %91 {offsets = [1, 0], sizes = [1, 1], strides = [1, 1]} : vector<16x1xf32> to vector<1x1xf32>
    %cst_96 = arith.constant 0.000000e+00 : f32
    %332 = vector.broadcast %cst_96 : f32 to vector<1x1xf32>
    %333 = arith.subf %332, %331 : vector<1x1xf32>
    %334 = vector.extract_strided_slice %86 {offsets = [0, 0], sizes = [14, 1], strides = [1, 1]} : vector<16x1xf32> to vector<14x1xf32>
    %335 = vector.extract_strided_slice %86 {offsets = [1, 0], sizes = [14, 1], strides = [1, 1]} : vector<16x1xf32> to vector<14x1xf32>
    %cst_97 = arith.constant 2.000000e+00 : f32
    %336 = vector.broadcast %cst_97 : f32 to vector<14x1xf32>
    %337 = arith.mulf %336, %335 : vector<14x1xf32>
    %338 = arith.addf %334, %337 : vector<14x1xf32>
    %339 = vector.extract_strided_slice %86 {offsets = [2, 0], sizes = [14, 1], strides = [1, 1]} : vector<16x1xf32> to vector<14x1xf32>
    %340 = arith.addf %338, %339 : vector<14x1xf32>
    %341 = vector.extract_strided_slice %91 {offsets = [0, 0], sizes = [14, 1], strides = [1, 1]} : vector<16x1xf32> to vector<14x1xf32>
    %342 = vector.extract_strided_slice %91 {offsets = [2, 0], sizes = [14, 1], strides = [1, 1]} : vector<16x1xf32> to vector<14x1xf32>
    %343 = arith.subf %341, %342 : vector<14x1xf32>
    %344 = vector.extract_strided_slice %86 {offsets = [14, 0], sizes = [1, 1], strides = [1, 1]} : vector<16x1xf32> to vector<1x1xf32>
    %345 = vector.extract_strided_slice %86 {offsets = [15, 0], sizes = [1, 1], strides = [1, 1]} : vector<16x1xf32> to vector<1x1xf32>
    %cst_98 = arith.constant 2.000000e+00 : f32
    %346 = vector.broadcast %cst_98 : f32 to vector<1x1xf32>
    %347 = arith.mulf %346, %345 : vector<1x1xf32>
    %348 = arith.addf %344, %347 : vector<1x1xf32>
    %349 = vector.extract_strided_slice %91 {offsets = [14, 0], sizes = [1, 1], strides = [1, 1]} : vector<16x1xf32> to vector<1x1xf32>
    %cst_99 = arith.constant 0.000000e+00 : f32
    %350 = vector.broadcast %cst_99 : f32 to vector<1x1xf32>
    %351 = arith.cmpf one, %306, %350 : vector<1x1xf32>
    %cst_100 = arith.constant 0.000000e+00 : f32
    %352 = vector.broadcast %cst_100 : f32 to vector<1x1xf32>
    %353 = arith.cmpf one, %309, %352 : vector<1x1xf32>
    %354 = arith.ori %351, %353 : vector<1x1xi1>
    %cst_101 = arith.constant 0.000000e+00 : f32
    %355 = vector.broadcast %cst_101 : f32 to vector<1x1xf32>
    %356 = arith.cmpf one, %330, %355 : vector<1x1xf32>
    %cst_102 = arith.constant 0.000000e+00 : f32
    %357 = vector.broadcast %cst_102 : f32 to vector<1x1xf32>
    %358 = arith.cmpf one, %333, %357 : vector<1x1xf32>
    %359 = arith.ori %356, %358 : vector<1x1xi1>
    %360 = arith.xori %354, %359 : vector<1x1xi1>
    %cst_103 = arith.constant 1.000000e+00 : f32
    %cst_104 = arith.constant 0.000000e+00 : f32
    %361 = vector.broadcast %cst_103 : f32 to vector<1x1xf32>
    %362 = vector.broadcast %cst_104 : f32 to vector<1x1xf32>
    %363 = arith.select %360, %361, %362 : vector<1x1xi1>, vector<1x1xf32>
    %cst_105 = arith.constant dense<0.000000e+00> : vector<1xf32>
    %364 = vector.multi_reduction <add>, %363, %cst_105 [0] : vector<1x1xf32> to vector<1xf32>
    %365 = vector.shape_cast %364 : vector<1xf32> to vector<1x1xf32>
    %cst_106 = arith.constant dense<0.000000e+00> : vector<1xf32>
    %366 = vector.multi_reduction <add>, %365, %cst_106 [1] : vector<1x1xf32> to vector<1xf32>
    %367 = vector.shape_cast %366 : vector<1xf32> to vector<1x1xf32>
    %368 = arith.addf %301, %367 : vector<1x1xf32>
    %cst_107 = arith.constant 0.000000e+00 : f32
    %369 = vector.broadcast %cst_107 : f32 to vector<14x1xf32>
    %370 = arith.cmpf one, %316, %369 : vector<14x1xf32>
    %cst_108 = arith.constant 0.000000e+00 : f32
    %371 = vector.broadcast %cst_108 : f32 to vector<14x1xf32>
    %372 = arith.cmpf one, %319, %371 : vector<14x1xf32>
    %373 = arith.ori %370, %372 : vector<14x1xi1>
    %cst_109 = arith.constant 0.000000e+00 : f32
    %374 = vector.broadcast %cst_109 : f32 to vector<14x1xf32>
    %375 = arith.cmpf one, %340, %374 : vector<14x1xf32>
    %cst_110 = arith.constant 0.000000e+00 : f32
    %376 = vector.broadcast %cst_110 : f32 to vector<14x1xf32>
    %377 = arith.cmpf one, %343, %376 : vector<14x1xf32>
    %378 = arith.ori %375, %377 : vector<14x1xi1>
    %379 = arith.xori %373, %378 : vector<14x1xi1>
    %cst_111 = arith.constant 1.000000e+00 : f32
    %cst_112 = arith.constant 0.000000e+00 : f32
    %380 = vector.broadcast %cst_111 : f32 to vector<14x1xf32>
    %381 = vector.broadcast %cst_112 : f32 to vector<14x1xf32>
    %382 = arith.select %379, %380, %381 : vector<14x1xi1>, vector<14x1xf32>
    %cst_113 = arith.constant dense<0.000000e+00> : vector<1xf32>
    %383 = vector.multi_reduction <add>, %382, %cst_113 [0] : vector<14x1xf32> to vector<1xf32>
    %384 = vector.shape_cast %383 : vector<1xf32> to vector<1x1xf32>
    %cst_114 = arith.constant dense<0.000000e+00> : vector<1xf32>
    %385 = vector.multi_reduction <add>, %384, %cst_114 [1] : vector<1x1xf32> to vector<1xf32>
    %386 = vector.shape_cast %385 : vector<1xf32> to vector<1x1xf32>
    %387 = arith.addf %368, %386 : vector<1x1xf32>
    %cst_115 = arith.constant 0.000000e+00 : f32
    %388 = vector.broadcast %cst_115 : f32 to vector<1x1xf32>
    %389 = arith.cmpf one, %324, %388 : vector<1x1xf32>
    %cst_116 = arith.constant 0.000000e+00 : f32
    %390 = vector.broadcast %cst_116 : f32 to vector<1x1xf32>
    %391 = arith.cmpf one, %325, %390 : vector<1x1xf32>
    %392 = arith.ori %389, %391 : vector<1x1xi1>
    %cst_117 = arith.constant 0.000000e+00 : f32
    %393 = vector.broadcast %cst_117 : f32 to vector<1x1xf32>
    %394 = arith.cmpf one, %348, %393 : vector<1x1xf32>
    %cst_118 = arith.constant 0.000000e+00 : f32
    %395 = vector.broadcast %cst_118 : f32 to vector<1x1xf32>
    %396 = arith.cmpf one, %349, %395 : vector<1x1xf32>
    %397 = arith.ori %394, %396 : vector<1x1xi1>
    %398 = arith.xori %392, %397 : vector<1x1xi1>
    %cst_119 = arith.constant 1.000000e+00 : f32
    %cst_120 = arith.constant 0.000000e+00 : f32
    %399 = vector.broadcast %cst_119 : f32 to vector<1x1xf32>
    %400 = vector.broadcast %cst_120 : f32 to vector<1x1xf32>
    %401 = arith.select %398, %399, %400 : vector<1x1xi1>, vector<1x1xf32>
    %cst_121 = arith.constant dense<0.000000e+00> : vector<1xf32>
    %402 = vector.multi_reduction <add>, %401, %cst_121 [0] : vector<1x1xf32> to vector<1xf32>
    %403 = vector.shape_cast %402 : vector<1xf32> to vector<1x1xf32>
    %cst_122 = arith.constant dense<0.000000e+00> : vector<1xf32>
    %404 = vector.multi_reduction <add>, %403, %cst_122 [1] : vector<1x1xf32> to vector<1xf32>
    %405 = vector.shape_cast %404 : vector<1xf32> to vector<1x1xf32>
    %406 = arith.addf %387, %405 : vector<1x1xf32>
    %c0_i32_123 = arith.constant 0 : i32
    %407 = vector.broadcast %c0_i32_123 : i32 to vector<1x128xi32>
    %408 = arith.cmpi eq, %0, %407 : vector<1x128xi32>
    %cst_124 = arith.constant 0.000000e+00 : f32
    %409 = vector.shape_cast %15 : vector<1x1xf32> to vector<1x1xf32>
    %410 = vector.broadcast %409 : vector<1x1xf32> to vector<1x128xf32>
    %411 = vector.broadcast %cst_124 : f32 to vector<1x128xf32>
    %412 = arith.select %408, %410, %411 : vector<1x128xi1>, vector<1x128xf32>
    %c1_i32 = arith.constant 1 : i32
    %413 = vector.broadcast %c1_i32 : i32 to vector<1x128xi32>
    %414 = arith.cmpi eq, %0, %413 : vector<1x128xi32>
    %cst_125 = arith.constant 0.000000e+00 : f32
    %415 = vector.shape_cast %19 : vector<1x1xf32> to vector<1x1xf32>
    %416 = vector.broadcast %415 : vector<1x1xf32> to vector<1x128xf32>
    %417 = vector.broadcast %cst_125 : f32 to vector<1x128xf32>
    %418 = arith.select %414, %416, %417 : vector<1x128xi1>, vector<1x128xf32>
    %419 = arith.addf %412, %418 : vector<1x128xf32>
    %c2_i32 = arith.constant 2 : i32
    %420 = vector.broadcast %c2_i32 : i32 to vector<1x128xi32>
    %421 = arith.cmpi eq, %0, %420 : vector<1x128xi32>
    %cst_126 = arith.constant 0.000000e+00 : f32
    %422 = vector.shape_cast %24 : vector<1x1xf32> to vector<1x1xf32>
    %423 = vector.broadcast %422 : vector<1x1xf32> to vector<1x128xf32>
    %424 = vector.broadcast %cst_126 : f32 to vector<1x128xf32>
    %425 = arith.select %421, %423, %424 : vector<1x128xi1>, vector<1x128xf32>
    %426 = arith.addf %419, %425 : vector<1x128xf32>
    %c3_i32 = arith.constant 3 : i32
    %427 = vector.broadcast %c3_i32 : i32 to vector<1x128xi32>
    %428 = arith.cmpi eq, %0, %427 : vector<1x128xi32>
    %cst_127 = arith.constant 0.000000e+00 : f32
    %429 = vector.shape_cast %40 : vector<1x1xf32> to vector<1x1xf32>
    %430 = vector.broadcast %429 : vector<1x1xf32> to vector<1x128xf32>
    %431 = vector.broadcast %cst_127 : f32 to vector<1x128xf32>
    %432 = arith.select %428, %430, %431 : vector<1x128xi1>, vector<1x128xf32>
    %433 = arith.addf %426, %432 : vector<1x128xf32>
    %c4_i32 = arith.constant 4 : i32
    %434 = vector.broadcast %c4_i32 : i32 to vector<1x128xi32>
    %435 = arith.cmpi eq, %0, %434 : vector<1x128xi32>
    %cst_128 = arith.constant 0.000000e+00 : f32
    %436 = vector.shape_cast %46 : vector<1x1xf32> to vector<1x1xf32>
    %437 = vector.broadcast %436 : vector<1x1xf32> to vector<1x128xf32>
    %438 = vector.broadcast %cst_128 : f32 to vector<1x128xf32>
    %439 = arith.select %435, %437, %438 : vector<1x128xi1>, vector<1x128xf32>
    %440 = arith.addf %433, %439 : vector<1x128xf32>
    %c5_i32 = arith.constant 5 : i32
    %441 = vector.broadcast %c5_i32 : i32 to vector<1x128xi32>
    %442 = arith.cmpi eq, %0, %441 : vector<1x128xi32>
    %cst_129 = arith.constant 0.000000e+00 : f32
    %443 = vector.shape_cast %406 : vector<1x1xf32> to vector<1x1xf32>
    %444 = vector.broadcast %443 : vector<1x1xf32> to vector<1x128xf32>
    %445 = vector.broadcast %cst_129 : f32 to vector<1x128xf32>
    %446 = arith.select %442, %444, %445 : vector<1x128xi1>, vector<1x128xf32>
    %447 = arith.addf %440, %446 : vector<1x128xf32>
    %c6_i32 = arith.constant 6 : i32
    %448 = vector.broadcast %c6_i32 : i32 to vector<1x128xi32>
    %449 = arith.cmpi eq, %0, %448 : vector<1x128xi32>
    %cst_130 = arith.constant 0.000000e+00 : f32
    %450 = vector.shape_cast %28 : vector<1x1xf32> to vector<1x1xf32>
    %451 = vector.broadcast %450 : vector<1x1xf32> to vector<1x128xf32>
    %452 = vector.broadcast %cst_130 : f32 to vector<1x128xf32>
    %453 = arith.select %449, %451, %452 : vector<1x128xi1>, vector<1x128xf32>
    %454 = arith.addf %447, %453 : vector<1x128xf32>
    %455 = vector.shape_cast %4 : vector<1x1xi1> to vector<1x1xi1>
    %456 = vector.broadcast %455 : vector<1x1xi1> to vector<1x128xi1>
    %457 = arith.select %456, %454, %2 : vector<1x128xi1>, vector<1x128xf32>
    %c1_i32_131 = arith.constant 1 : i32
    %c0_132 = arith.constant 0 : index
    %c0_133 = arith.constant 0 : index
    %c0_134 = arith.constant 0 : index
    %458 = vector.load %arg3[%c0_132, %c0_133, %c0_134] : memref<1x1x128xf32, #tpu.memory_space<vmem>>, vector<1x1x128xf32>
    %459 = vector.shape_cast %458 : vector<1x1x128xf32> to vector<1x128xf32>
    %460 = vector.shape_cast %457 : vector<1x128xf32> to vector<1x1x128xf32>
    tpu.vector_store %arg3[%c0_132, %c0_133, %c0_134], %460 {strides = array<i32>} : memref<1x1x128xf32, #tpu.memory_space<vmem>>, vector<1x1x128xf32>,
    return
  }
  func.func @transform_0(%arg0: i32) -> (i32, i32, i32) {
    %c0_i32 = arith.constant 0 : i32
    %c0_i32_0 = arith.constant 0 : i32
    %c0_i32_1 = arith.constant 0 : i32
    return %arg0, %c0_i32, %c0_i32_0 : i32, i32, i32
  }
  func.func @transform_1(%arg0: i32) -> (i32, i32, i32) {
    %c0_i32 = arith.constant 0 : i32
    %c0_i32_0 = arith.constant 0 : i32
    %c0_i32_1 = arith.constant 0 : i32
    return %arg0, %c0_i32, %c0_i32_0 : i32, i32, i32
  }
  func.func @transform_2(%arg0: i32) -> (i32, i32, i32) {
    %c0_i32 = arith.constant 0 : i32
    %c0_i32_0 = arith.constant 0 : i32
    %c0_i32_1 = arith.constant 0 : i32
    return %arg0, %c0_i32, %c0_i32_0 : i32, i32, i32
  }
}

</mosaic_0001>

<bundles_post_ra>
// kernel: tpu_custom_call.1
= control target key start
LH: loop header
LB: loop body
LE: loop exit
PB: predicated region body
PF: predicated region fallthrough
CT: control target
= control target key end

     0   :  { %7 = vsyncpa [#allocation3], 0  ;;  %s1771_s0 = inlined_call_operand.hbm [shape: f32[2,16,16], index: 0, kind: input, shape index: {}]   ;;  %s1772_s1 = inlined_call_operand.hbm [shape: bf16[2,16,16], index: 1, kind: input, shape index: {}]   ;;  %s1773_s2 = inlined_call_operand.hbm [shape: f32[2,1,128], index: 2, kind: output, shape index: {}]  }
   0x1   :  { %9 = vsyncpa [#allocation3 + $0x1], 0 }
   0x2   :  { %10 = vsyncpa [#allocation6], 0 }
   0x3   :  { %12 = vsyncpa [#allocation6 + $0x1], 0 }
   0x4   :  { %13 = vsyncpa [#allocation4], 0 }
   0x5   :  { %15 = vsyncpa [#allocation4 + $0x1], 0  ;;  %s1184_s9 = smov 0   ;;  %s1186_s10 = smov 0  }
   0x6   :  { %s1188_s11 = smov 0   ;;  %s1190_s12 = smov 0  }
   0x7 LB: > { %s1205_s13 = sadd.s32 4294967295, %s1153_s12   ;;  %s918_s14 = sadd.s32 4294967294, %s1153_s12   ;;  %s1153_s12 = sphi %s1190_s12, %s1819_s12   ;;  %s1149_s11 = sphi %s1188_s11, %s1818_s11   ;;  %s1145_s10 = sphi %s1186_s10, %s1817_s10   ;;  %s1141_s9 = sphi %s1184_s9, %s1816_s9  }
   0x8   : > { %s1209_s15 = sadd.s32 1, %s1153_s12   ;;  %s28_s16 = sadd.s32 1, %s1149_s11 }
   0x9   : > { %s25_s17 = ssub.s32 %s1153_s12, %s1209_s15  ;;  %p35_p0 = scmp.ne.s32.totalorder %s1149_s11, %s1145_s10 }
   0xa   : > { %p26_p1 = scmp.eq.s32.totalorder %s25_s17, 0  ;;  %p36_p2 = scmp.eq.s32.totalorder %s1153_s12, 0 }
   0xb   : > { %p41_p3 = scmp.ne.s32.totalorder %s1145_s10, %s1141_s9  ;;  %p42_p4 = scmp.eq.s32.totalorder %s1205_s13, 0 }
   0xc   : > { %s1221_s18 = scalar_select %p26_p1, %s1149_s11, %s28_s16  }
   0xd   : > { %p1223_p5 = por %p36_p2, %p35_p0  ;;  %p1227_p6 = por %p42_p4, %p41_p3 }
   0xe   : > { %p91_p7 = scmp.eq.s32.totalorder %s1205_s13, 1  ;;  %p97_p8 = scmp.eq.s32.totalorder %s918_s14, 1 }
   0xf   : > { %s1780_s20 = scalar_select %p1227_p6, 1, 0 }
  0x10   : > { %p956_p10 = scmp.lt.s32.totalorder %s1153_s12, 2  ;;  %p1234_p11 = por %p91_p7, %p35_p0 }
  0x11   : > { %p1238_p12 = por %p97_p8, %p41_p3  ;;  %s1243_s23 = sand.u32 1, %s1149_s11  }
  0x12   : > { %s1781_s21 = scalar_select %p1234_p11, 1, 0 }
  0x13   : > { %s1782_s22 = scalar_select %p1238_p12, 1, 0 }
  0x14   : > { %s933_s24 = sshll.u32 %s1153_s12, 8  ;;  %s921_s25 = sshll.u32 %s1243_s23, 4 }
  0x15   : > { %s1250_s28 = scalar_lea.hbm %s1771_s0, %s933_s24  ;;  %s121_s29 = scalar_lea.vmem [#allocation2], %s921_s25 }
  0x16   : > { %s128_s30 = sshll.u32 %s121_s29, 4  ;;  %p1254_p13 = pnand %p956_p10, %p1223_p5  ;;  %s1258_s30 = int_to_ptr.vmem [resolvable:$true] %s128_s30 }
  0x17   : > { %s118_s4 = scalar_lea.sflag [#allocation3], %s1243_s23  ;;  %s1023_s5 = scalar_lea.hbm %s1250_s28, 256 }
  0x18   : > { %p1024_p0 = scmp.ne.s32.totalorder %s1250_s28, %s1023_s5  ;;  %p1025_p1 = pneg %p1254_p13 }
  0x19   : > { %s1028_s8 = scalar_lea.hbm %s1771_s0, 512  ;;  %p1029_p4 = scmp.lt.u32.totalorder %s1250_s28, %s1771_s0 }
  0x1a   : > { %p1026_p2 = pnand %p1025_p1, %p1024_p0  ;;  %p1030_p5 = scmp.lt.u32.totalorder %s1028_s8, %s1023_s5 }
  0x1b   : > { %p1032_p8 = scmp.lt.u32.totalorder %s1023_s5, %s1250_s28 }
  0x1c   : > { %p1027_p3 = pneg %p1026_p2  ;;  %p1031_p7 = por %p1030_p5, %p1029_p4 }
  0x1e   : > { %p1033_p10 = por %p1032_p8, %p1031_p7 }
  0x20   : > { %p1034_p9 = pnand %p1033_p10, %p1027_p3 }
  0x22   : > { %1037 = shalt.err (!%p1034_p9)
}
  0x23   : > { %s1038_s17 = scalar_lea.vmem %s1258_s30, 256  ;;  %s1155_s19 = smov [#allocation2]  }
  0x24   : > { %p1039_p0 = scmp.ne.s32.totalorder %s1258_s30, %s1038_s17  ;;  %s1043_s24 = sshll.u32 %s1155_s19, 4  ;;  %s1044_s24 = int_to_ptr.vmem [resolvable:$false] %s1043_s24 }
  0x25   : > { %s1045_s25 = scalar_lea.vmem %s1044_s24, 512  ;;  %p1046_p11 = scmp.lt.s32.totalorder %s1258_s30, %s1044_s24 }
  0x26   : > { %p1041_p2 = pnand %p1039_p0, %p1025_p1  ;;  %p1047_p4 = scmp.lt.s32.totalorder %s1045_s25, %s1038_s17 }
  0x28   : > { %p1042_p12 = pneg %p1041_p2  ;;  %p1048_p5 = por %p1047_p4, %p1046_p11 }
  0x2a   : > { %p1049_p7 = pnand %p1048_p5, %p1042_p12 }
  0x2c   : > { %1052 = shalt.err (!%p1049_p7)
}
  0x2d   : > { %s1156_s26 = smov 128   ;;  %s1157_s27 = smov 8  }
  0x2e   : > { %948 = dma.hbm_to_vmem [thread:$0]  (!%p1254_p13), %s1250_s28, 256, %s1258_s30, %s118_s4, %s1156_s26, %s1156_s26, %s1157_s27  }
  0x2f   : > { %p927_p9 = scmp.ge.s32.totalorder %s1153_s12, 1  ;;  %p157_p3 = scmp.lt.s32.totalorder %s1153_s12, 3 }
  0x30   : > { %s924_s29 = sshll.u32 %s1243_s23, 3  ;;  %s934_s6 = sshll.u32 %s1153_s12, 7 }
  0x31   : > { %p1291_p11 = pnand %p927_p9, %p157_p3  ;;  %s142_s7 = scalar_lea.vmem [#allocation5], %s924_s29 }
  0x32   : > { %s149_s8 = sshll.u32 %s142_s7, 4  ;;  %s1299_s17 = scalar_lea.hbm %s1772_s1, %s934_s6  ;;  %s1301_s8 = int_to_ptr.vmem [resolvable:$true] %s149_s8 }
  0x33   : > { %s139_s28 = scalar_lea.sflag [#allocation6], %s1243_s23  ;;  %s1053_s30 = scalar_lea.hbm %s1299_s17, 128 }
  0x34   : > { %p1054_p12 = scmp.ne.s32.totalorder %s1299_s17, %s1053_s30  ;;  %s1058_s24 = scalar_lea.hbm %s1772_s1, 256 }
  0x35   : > { %p1059_p0 = scmp.lt.u32.totalorder %s1299_s17, %s1772_s1  ;;  %p1060_p2 = scmp.lt.u32.totalorder %s1058_s24, %s1053_s30 }
  0x36   : > { %p1056_p8 = pnand %p1054_p12, %p1025_p1  ;;  %p1062_p5 = scmp.lt.u32.totalorder %s1053_s30, %s1299_s17 }
  0x37   : > { %p1061_p4 = por %p1060_p2, %p1059_p0 }
  0x38   : > { %p1057_p10 = pneg %p1056_p8 }
  0x39   : > { %p1063_p7 = por %p1062_p5, %p1061_p4 }
  0x3b   : > { %p1064_p9 = pnand %p1063_p7, %p1057_p10 }
  0x3d   : > { %1067 = shalt.err (!%p1064_p9)
}
  0x3e   : > { %s1068_s27 = scalar_lea.vmem %s1301_s8, 128  ;;  %s1158_s29 = smov [#allocation5]  }
  0x3f   : > { %p1069_p3 = scmp.ne.s32.totalorder %s1301_s8, %s1068_s27  ;;  %s1073_s6 = sshll.u32 %s1158_s29, 4  ;;  %s1074_s6 = int_to_ptr.vmem [resolvable:$false] %s1073_s6 }
  0x40   : > { %s1075_s7 = scalar_lea.vmem %s1074_s6, 256  ;;  %p1076_p6 = scmp.lt.s32.totalorder %s1301_s8, %s1074_s6 }
  0x41   : > { %p1071_p12 = pnand %p1069_p3, %p1025_p1  ;;  %p1077_p0 = scmp.lt.s32.totalorder %s1075_s7, %s1068_s27 }
  0x43   : > { %p1072_p8 = pneg %p1071_p12  ;;  %p1078_p2 = por %p1077_p0, %p1076_p6 }
  0x45   : > { %p1079_p4 = pnand %p1078_p2, %p1072_p8 }
  0x47   : > { %1082 = shalt.err (!%p1079_p4)
}
  0x48   : > { %s1159_s14 = smov 64   ;;  %s1160_s16 = smov 4  }
  0x49   : > { %951 = dma.hbm_to_vmem [thread:$0]  (!%p1254_p13), %s1299_s17, 128, %s1301_s8, %s139_s28, %s1159_s14, %s1159_s14, %s1160_s16  }
  0x4a   : > { %161 = sbr.rel (%p1291_p11) target bundleno = 574 (0x23e), region = 28  ;;  %s1332_s30 = sand.u32 (!%p1291_p11), 1, %s1145_s10  }
  0x4b   : > { %s928_s4 = sshll.u32 (!%p1291_p11), %s1332_s30, 4  ;;  %s164_s19 = scalar_lea.sflag (!%p1291_p11), [#allocation3], %s1332_s30 }
  0x4c   : > { %s167_s24 = scalar_lea.vmem (!%p1291_p11), [#allocation2], %s928_s4  ;;  %p1785_p6 = scmp.ne.s32.totalorder (!%p1291_p11), %s1780_s20, 0 }
  0x51   : > { %1128 = dma.done.wait (%p1785_p6), %s164_s19, 256  }
  0x52   : > { %1130 = vsyncadd (%p1785_p6), %s164_s19, 4294967040  ;;  %s929_s23 = sshll.u32 %s1332_s30, 3  ;;  %s173_s3 = scalar_lea.sflag [#allocation6], %s1332_s30 }
  0x53   : > { %s176_s5 = scalar_lea.vmem [#allocation5], %s929_s23 }
  0x54   : > { %1132 = dma.done.wait (%p1785_p6), %s173_s3, 128  }
  0x55   : > { %1134 = vsyncadd (%p1785_p6), %s173_s3, 4294967168  ;;  %v936_v0 = vld [vmem:[%s176_s5] sm:$0xff]   ;;  %s1161_s8 = smov 126   ;;  %v1353_v4 = vld [vmem:[%s167_s24 + $0x8] sm:$0xff]  ;;  %s1162_s20 = smov 127   ;;  %vm1776_vm0 = vcmask 1045504  }
  0x56   : > { %v1346_v1 = vld [vmem:[%s167_s24] sm:$0xff]  ;;  %v1348_v2 = vunpack.c.l.bf16 %v936_v0  ;;  %v1350_v3 = vunpack.c.h.bf16 %v936_v0  ;;  %v1359_v6 = vmul.f32 2.0, %v1353_v4  ;;  %v675_v26 = vrot.slane %v1353_v4, 2  ;;  %s1164_s17 = smov 1   ;;  %s1166_s28 = smov 115  }
  0x57   : > { %319 = vrot.lane.b32.xlu0 %v1346_v1, %s1161_s8  ;;  %v1362_v7 = vmul.f32 2.0, %v1346_v1  ;;  %v663_v16 = vrot.slane %v1346_v1, 1  ;;  %v674_v22 = vrot.slane %v1346_v1, 2  ;;  %vm1777_vm1 = vcmask 1046528   ;;  %s930_s25 = sshll.u32 %s1205_s13, 4  ;;  %s200_s26 = scalar_lea.vmem [#allocation7], %s1332_s30 }
  0x58   : > { %v1001_v5 = vpack.i.bf16 %v1350_v3, %v1348_v2  ;;  %v1367_v8 = vmul.f32 2.0, %v1350_v3  ;;  %v1370_v9 = vmul.f32 2.0, %v1348_v2  ;;  %v690_v21 = vrot.slane %v1348_v2, 1  ;;  %s829_s27 = sshll.u32 %s200_s26, 4  ;;  %s1727_s7 = scalar_lea.hbm %s1773_s2, %s930_s25  ;;  %s1729_s27 = int_to_ptr.vmem [resolvable:$true] %s829_s27 }
  0x59   : > { %v668_v27 = vrot.slane %v1359_v6, 1  ;;  %v667_v28 = vrot.slane %v1362_v7, 1  ;;  %v1407_v29 = vadd.f32 %v663_v16, %v1362_v7  ;;  %v1163_v50 = vmov 0   ;;  %s817_s14 = scalar_lea.sflag [#allocation4], %s1332_s30  ;;  %s1083_s16 = scalar_lea.vmem %s1729_s27, 16 }
  0x5a   : > { %1002 = vrot.lane.b32.xlu1 %v1001_v5, %s1161_s8  ;;  %v1415_v35 = vadd.f32 %v690_v21, %v1370_v9  ;;  %v694_v37 = vrot.slane %v1370_v9, 1  ;;  %p1084_p13 = scmp.ne.s32.totalorder %s1729_s27, %s1083_s16  ;;  %p1813_p1 = scmp.ne.s32.totalorder %s1781_s21, 0 }
  0x5b   : > { %321 = vrot.lane.b32.xlu0 %v1353_v4, %s1161_s8  ;;  %vm717_vm6 = vcmp.ne.f32.partialorder %v1407_v29, 0.0  ;;  %s1168_s13 = smov [#allocation7]  }
  0x5c   : > { %vm723_vm5 = vcmp.ne.f32.partialorder %v1415_v35, 0.0  ;;  %p1085_p11 = pnand %p1084_p13, %p1813_p1  ;;  %s1087_s4 = sshll.u32 %s1168_s13, 4  ;;  %s1088_s4 = int_to_ptr.vmem [resolvable:$false] %s1087_s4 }
  0x5d   : > { %s1089_s19 = scalar_lea.vmem %s1088_s4, 32  ;;  %p1090_p5 = scmp.lt.s32.totalorder %s1729_s27, %s1088_s4 }
  0x5e   : > { %329 = vrot.lane.b32.xlu1 %v1362_v7, %s1162_s20  ;;  %p1086_p10 = pneg %p1085_p11  ;;  %p1091_p7 = scmp.lt.s32.totalorder %s1089_s19, %s1083_s16 }
  0x5f   : > { %331 = vrot.lane.b32.xlu0 %v1359_v6, %s1162_s20 }
  0x60   : > { %p1092_p9 = por %p1091_p7, %p1090_p5 }
  0x62   : > { %363 = vrot.lane.b32.xlu1 %v1370_v9, %s1162_s20  ;;  %p1093_p3 = pnand %p1092_p9, %p1086_p10 }
  0x63   : > { %365 = vrot.lane.b32.xlu0 %v1367_v8, %s1162_s20 }
  0x66   : > { %311 = vrot.lane.b32.xlu1 %v1346_v1, %s1162_s20 }
  0x67   : > { %313 = vrot.lane.b32.xlu0 %v1353_v4, %s1162_s20 }
  0x6a   : > { %1007 = vrot.lane.b32.xlu1 %v1001_v5, %s1162_s20 }
  0xc9   : > { %v1376_v10 = vpop.permute.xlu0 %319 }
  0xca   : > { %v1384_v15 = vsub.f32 %v1346_v1, %v1376_v10 }
  0xcc   : > { %v1378_v11 = vpop.permute.xlu1 %1002  ;;  %v1410_v30 = vmul.f32 2.0, %v1384_v15  ;;  %v546_v40 = vrot.slane %v1384_v15, 2 }
  0xcd   : > { %v1380_v12 = vpop.permute.xlu0 %321  ;;  %v1005_v24 = vunpack.i.h.bf16 %v1378_v11  ;;  %v1004_v25 = vunpack.i.l.bf16 %v1378_v11 }
  0xce   : > { %v1389_v17 = vsub.f32 %v1353_v4, %v1380_v12  ;;  %v538_v46 = vrot.slane %v1410_v30, 1 }
  0xcf   : > { %v1425_v41 = vsub.f32 %v1350_v3, %v1005_v24  ;;  %v1430_v42 = vsub.f32 %v1348_v2, %v1004_v25 }
  0xd0   : > { %v330_v14 = vpop.permute.xlu1 %329  ;;  %v535_v31 = vmul.f32 2.0, %v1389_v17  ;;  %v547_v43 = vrot.slane %v1389_v17, 2 }
  0xd1   : > { %v332_v13 = vpop.permute.xlu0 %331  ;;  %v1392_v18 = vadd.f32 %v330_v14, %v1346_v1  ;;  %v1438_v53 = vmul.f32 2.0, %v1425_v41  ;;  %v1446_v56 = vmul.f32 2.0, %v1430_v42 }
  0xd2   : > { %v539_v47 = vrot.slane %v535_v31, 1  ;;  %v1441_v54 = vadd.f32 %v332_v13, %v1353_v4  ;;  %v548_v35 = vsel %vm1776_vm0, %v546_v40, %v547_v43 }
  0xd3   : > { %v666_v34 = vsub.f32 0.0, %v1392_v18 }
  0xd4   : > { %v364_v20 = vpop.permute.xlu1 %363  ;;  %v1452_v60 = vadd.f32 %v539_v47, %v1389_v17 }
  0xd5   : > { %v1394_v19 = vpop.permute.xlu0 %365  ;;  %v1399_v23 = vadd.f32 %v1348_v2, %v364_v20  ;;  %vm718_vm4 = vcmp.ne.f32.partialorder %v666_v34, 0.0 }
  0xd6   : > { %v719_v59 = vsel %vm718_vm4, 1, %v1163_v50  ;;  %v1464_v34 = vadd.f32 %v1350_v3, %v1394_v19 }
  0xd7   : > { %v693_v36 = vsub.f32 0.0, %v1399_v23  ;;  %v720_v20 = vrot.slane %v719_v59, 1 }
  0xd8   : > { %v312_v33 = vpop.permute.xlu1 %311 }
  0xd9   : > { %v314_v32 = vpop.permute.xlu0 %313  ;;  %v317_v39 = vadd.f32 %v312_v33, %v1362_v7  ;;  %vm724_vm2 = vcmp.ne.f32.partialorder %v693_v36, 0.0  ;;  %v572_v33 = vrot.slane %v1438_v53, 1  ;;  %v540_v36 = vsel %vm1777_vm1, %v538_v46, %v539_v47 }
  0xda   : > { %v318_v38 = vadd.f32 %v314_v32, %v1359_v6  ;;  %v725_v52 = vsel %vm724_vm2, 1, %v1163_v50  ;;  %vm721_vm13 = vcmp.ne.s32.totalorder %v720_v20, 0  ;;  %v1480_v46 = vadd.f32 %v1004_v25, %v1399_v23 }
  0xdb   : > { %v378_v45 = vsub.f32 0.0, %v317_v39  ;;  %v401_v48 = vrot.slane %v317_v39, 2  ;;  %v726_v62 = vrot.slane %v725_v52, 1  ;;  %v571_v47 = vrot.slane %v1446_v56, 1  ;;  %vm1511_vm2 = vmor %vm717_vm6, %vm721_vm13 }
  0xdc   : > { %v402_v44 = vrot.slane %v318_v38, 2  ;;  %v1008_v49 = vpop.permute.xlu1 %1007  ;;  %vm508_vm3 = vcmp.ne.f32.partialorder %v318_v38, 0.0  ;;  %v579_v25 = vrot.slane %v1430_v42, 2  ;;  %v552_v52 = vadd.f32 %v547_v43, %v1452_v60 }
  0xdd   : > { %v509_v51 = vsel %vm508_vm3, 1, %v1163_v50  ;;  %v1021_v57 = vadd.high.f32.bf16 %v1367_v8, %v1008_v49  ;;  %v1022_v58 = vadd.low.f32.bf16 %v1370_v9, %v1008_v49  ;;  %vm442_vm7 = vcmp.ne.f32.partialorder %v378_v45, 0.0 }
  0xde   : > { %510 = vrot.lane.b32.xlu1 %v509_v51, %s1164_s17  ;;  %v407_v55 = vsub.f32 %v318_v38, %v402_v44  ;;  %v403_v61 = vsel %vm1776_vm0, %v401_v48, %v402_v44  ;;  %v443_v14 = vsel %vm442_vm7, 1, %v1163_v50  ;;  %vm727_vm11 = vcmp.ne.s32.totalorder %v726_v62, 0 }
  0xdf   : > { %v434_v63 = vrot.slane %v1022_v58, 2  ;;  %vm515_vm9 = vcmp.ne.f32.partialorder %v1021_v57, 0.0  ;;  %v435_v5 = vrot.slane %v1021_v57, 2  ;;  %v413_v16 = vsub.f32 0.0, %v1022_v58  ;;  %vm1486_vm15 = vmor %vm723_vm5, %vm727_vm11 }
  0xe0   : > { %vm465_vm8 = vcmp.ne.f32.partialorder %v407_v55, 0.0  ;;  %v516_v13 = vsel %vm515_vm9, 1, %v1163_v50  ;;  %v406_v31 = vsub.f32 %v317_v39, %v403_v61  ;;  %v1469_v38 = vadd.f32 %v1441_v54, %v1380_v12  ;;  %vm729_vm4 = vmxor %vm1511_vm2, %vm1486_vm15 }
  0xe1   : > { %v467_v0 = vsel %vm465_vm8, 1, %v1163_v50  ;;  %517 = vrot.lane.b32.xlu0 %v516_v13, %s1164_s17  ;;  %v440_v21 = vsub.f32 %v1021_v57, %v435_v5  ;;  %v436_v32 = vsel %vm1776_vm0, %v434_v63, %v435_v5  ;;  %vm450_vm10 = vcmp.ne.f32.partialorder %v413_v16, 0.0 }
  0xe2   : > { %470 = vrot.lane.b32.xlu1 %v467_v0, %s1164_s17  ;;  %v1473_v44 = vadd.f32 %v1392_v18, %v1376_v10  ;;  %v444_v39 = vrot.slane %v443_v14, 1  ;;  %v451_v48 = vsel %vm450_vm10, 1, %v1163_v50  ;;  %v439_v19 = vsub.f32 %v1022_v58, %v436_v32 }
  0xe3   : > { %vm479_vm12 = vcmp.ne.f32.partialorder %v440_v21, 0.0  ;;  %vm464_vm14 = vcmp.ne.f32.partialorder %v406_v31, 0.0  ;;  %v1491_v12 = vadd.f32 %v572_v33, %v1425_v41  ;;  %v580_v49 = vrot.slane %v1425_v41, 2 }
  0xe4   : > { %v481_v45 = vsel %vm479_vm12, 1, %v1163_v50  ;;  %v1499_v51 = vadd.f32 %v1005_v24, %v1464_v34  ;;  %v452_v53 = vrot.slane %v451_v48, 1  ;;  %v543_v11 = vadd.f32 %v540_v36, %v1384_v15 }
  0xe5   : > { %445 = vrot.lane.b32.xlu0 %v444_v39, %s1164_s17  ;;  %v555_v24 = vrot.slane %v1473_v44, 2  ;;  %v466_v55 = vsel %vm464_vm14, 1, %v1163_v50  ;;  %vm478_vm3 = vcmp.ne.f32.partialorder %v439_v19, 0.0  ;;  %v556_v17 = vrot.slane %v1469_v38, 2 }
  0xe6   : > { %484 = vrot.lane.b32.xlu1 %v481_v45, %s1164_s17  ;;  %v573_v29 = vsel %vm1777_vm1, %v571_v47, %v572_v33  ;;  %v585_v40 = vadd.f32 %v580_v49, %v1491_v12  ;;  %v551_v43 = vadd.f32 %v548_v35, %v543_v11  ;;  %v588_v58 = vrot.slane %v1480_v46, 2 }
  0xe7   : > { %v576_v57 = vadd.f32 %v573_v29, %v1430_v42  ;;  %v557_v59 = vsel %vm1776_vm0, %v555_v24, %v556_v17  ;;  %v561_v61 = vsub.f32 %v1469_v38, %v556_v17  ;;  %v581_v62 = vsel %vm1776_vm0, %v579_v25, %v580_v49 }
  0xe8   : > { %v589_v63 = vrot.slane %v1499_v51, 2  ;;  %v480_v0 = vsel %vm478_vm3, 1, %v1163_v50  ;;  %v1165_v5 = vmov 0.0   ;;  %v560_v14 = vsub.f32 %v1473_v44, %v557_v59 }
  0xe9   : > { %468 = vrot.lane.b32.xlu0 %v466_v55, %s1164_s17  ;;  %v730_v13 = vsel %vm729_vm4, 1.0, %v1165_v5  ;;  %v584_v16 = vadd.f32 %v581_v62, %v576_v57  ;;  %vm616_vm5 = vcmp.ne.f32.partialorder %v552_v52, 0.0  ;;  %vm618_vm6 = vcmp.ne.f32.partialorder %v561_v61, 0.0 }
  0xea   : > { %453 = vrot.lane.b32.xlu1 %v452_v53, %s1164_s17  ;;  %v590_v20 = vsel %vm1776_vm0, %v588_v58, %v589_v63  ;;  %v594_v21 = vsub.f32 %v1499_v51, %v589_v63  ;;  %v695_v31 = vrot.slane %v1367_v8, 1  ;;  %vm615_vm7 = vcmp.ne.f32.partialorder %v551_v43, 0.0  ;;  %vm1542_vm9 = vmor %vm616_vm5, %vm618_vm6 }
  0xeb   : > { %v593_v32 = vsub.f32 %v1480_v46, %v590_v20  ;;  %vm617_vm8 = vcmp.ne.f32.partialorder %v560_v14, 0.0  ;;  %v669_v36 = vsel %vm1777_vm1, %v667_v28, %v668_v27  ;;  %v701_v8 = vrot.slane %v1348_v2, 2 }
  0xec   : > { %vm1552_vm10 = vmor %vm615_vm7, %vm617_vm8  ;;  %vm622_vm11 = vcmp.ne.f32.partialorder %v585_v40, 0.0  ;;  %vm624_vm12 = vcmp.ne.f32.partialorder %v594_v21, 0.0  ;;  %v696_v45 = vsel %vm1777_vm1, %v694_v37, %v695_v31  ;;  %v702_v48 = vrot.slane %v1350_v3, 2 }
  0xed   : > { %482 = vrot.lane.b32.xlu0 %v480_v0, %s1164_s17  ;;  %vm621_vm13 = vcmp.ne.f32.partialorder %v584_v16, 0.0  ;;  %vm623_vm14 = vcmp.ne.f32.partialorder %v593_v32, 0.0  ;;  %vm1560_vm15 = vmor %vm622_vm11, %vm624_vm12  ;;  %v684_v28 = vrot.slane %v1441_v54, 2  ;;  %v683_v19 = vrot.slane %v1392_v18, 2 }
  0xee   : > { %734 = vrot.lane.b32.xlu1 %v730_v13, %s1166_s28  ;;  %vm625_vm2 = vmor %vm621_vm13, %vm623_vm14  ;;  %vm1778_vm3 = vcmask 113664   ;;  %v1569_v9 = vadd.f32 %v668_v27, %v1353_v4  ;;  %v711_v37 = vrot.slane %v1464_v34, 2  ;;  %v710_v10 = vrot.slane %v1399_v23, 2 }
  0xef   : > { %vm627_vm4 = vmxor %vm1552_vm10, %vm625_vm2  ;;  %vm633_vm5 = vcmask 111616   ;;  %v676_v47 = vsel %vm1776_vm0, %v674_v22, %v675_v26  ;;  %v672_v49 = vadd.f32 %v669_v36, %v1346_v1  ;;  %v699_v27 = vadd.f32 %v1348_v2, %v696_v45 }
  0xf0   : > { %vm628_vm6 = vmxor %vm1542_vm9, %vm1560_vm15  ;;  %v629_v6 = vsel %vm627_vm4, 1.0, %v1165_v5  ;;  %v703_v25 = vsel %vm1776_vm0, %v701_v8, %v702_v48  ;;  %v685_v53 = vsel %vm1776_vm0, %v683_v19, %v684_v28  ;;  %v680_v41 = vadd.f32 %v675_v26, %v1569_v9 }
  0xf1   : > { %v630_v35 = vsel %vm628_vm6, 1.0, %v1165_v5  ;;  %v632_v52 = vsel %vm1778_vm3, %v629_v6, 0.0  ;;  %v1595_v11 = vadd.f32 %v1350_v3, %v695_v31  ;;  %v689_v24 = vsub.f32 %v1441_v54, %v684_v28 }
  0xf2   : > { %v634_v22 = vsel %vm633_vm5, %v630_v35, 0.0  ;;  %v712_v55 = vsel %vm1776_vm0, %v710_v10, %v711_v37  ;;  %v567_v17 = vsub.f32 0.0, %v1480_v46  ;;  %v716_v40 = vsub.f32 %v1464_v34, %v711_v37 }
  0xf3   : > { %v635_v29 = vadd.f32 %v634_v22, %v632_v52  ;;  %v707_v43 = vadd.f32 %v702_v48, %v1595_v11  ;;  %v679_v57 = vadd.f32 %v676_v47, %v672_v49  ;;  %v688_v58 = vsub.f32 %v1392_v18, %v685_v53 }
  0xf4   : > { %v706_v59 = vadd.f32 %v703_v25, %v699_v27  ;;  %v534_v26 = vsub.f32 0.0, %v1473_v44  ;;  %v715_v61 = vsub.f32 %v1399_v23, %v712_v55  ;;  %vm741_vm7 = vcmp.ne.f32.partialorder %v689_v24, 0.0 }
  0xf5   : > { %v636_v62 = vrot.slane %v635_v29, 4  ;;  %vm602_vm8 = vcmp.ne.f32.partialorder %v567_v17, 0.0  ;;  %vm739_vm9 = vcmp.ne.f32.partialorder %v680_v41, 0.0  ;;  %vm747_vm10 = vcmp.ne.f32.partialorder %v716_v40, 0.0 }
  0xf6   : > { %vm745_vm11 = vcmp.ne.f32.partialorder %v707_v43, 0.0  ;;  %vm738_vm12 = vcmp.ne.f32.partialorder %v679_v57, 0.0  ;;  %vm740_vm13 = vcmp.ne.f32.partialorder %v688_v58, 0.0  ;;  %vm744_vm14 = vcmp.ne.f32.partialorder %v706_v59, 0.0  ;;  %vm1607_vm4 = vmor %vm739_vm9, %vm741_vm7 }
  0xf7   : > { %vm596_vm15 = vcmp.ne.f32.partialorder %v534_v26, 0.0  ;;  %vm746_vm2 = vcmp.ne.f32.partialorder %v715_v61, 0.0  ;;  %v564_v46 = vrot.slane %v1430_v42, 1  ;;  %v603_v18 = vsel %vm602_vm8, 1, %v1163_v50  ;;  %vm1611_vm5 = vmor %vm745_vm11, %vm747_vm10 }
  0xf8   : > { %v637_v63 = vadd.f32 %v636_v62, %v635_v29  ;;  %vm1615_vm6 = vmor %vm738_vm12, %vm740_vm13  ;;  %vm650_vm0 = vcmp.ne.f32.partialorder %v1499_v51, 0.0  ;;  %v597_v13 = vsel %vm596_vm15, 1, %v1163_v50  ;;  %vm646_vm7 = vcmp.ne.f32.partialorder %v1452_v60, 0.0 }
  0xf9   : > { %vm1621_vm1 = vmor %vm744_vm14, %vm746_vm2  ;;  %v531_v14 = vrot.slane %v1384_v15, 1  ;;  %v604_v16 = vrot.slane %v603_v18, 1  ;;  %vm647_vm8 = vcmp.ne.f32.partialorder %v1469_v38, 0.0  ;;  %vm649_vm9 = vcmp.ne.f32.partialorder %v1491_v12, 0.0 }
  0xfa   : > { %v566_v20 = vadd.f32 %v564_v46, %v1446_v56  ;;  %v638_v21 = vrot.slane %v637_v63, 2  ;;  %vm751_vm10 = vmxor %vm1607_vm4, %vm1611_vm5  ;;  %v598_v60 = vrot.slane %v597_v13, 1  ;;  %vm756_vm15 = vcmask 119920  }
  0xfb   : > { %vm1634_vm11 = vmor %vm649_vm9, %vm650_vm0  ;;  %v533_v15 = vadd.f32 %v531_v14, %v1410_v30  ;;  %vm605_vm14 = vcmp.ne.s32.totalorder %v604_v16, 0  ;;  %vm754_vm0 = vcmask 121968   ;;  %v269_v38 = vsub.f32 1.0, %v1346_v1 }
  0xfc   : > { %vm750_vm12 = vmxor %vm1615_vm6, %vm1621_vm1  ;;  %vm601_vm3 = vcmp.ne.f32.partialorder %v566_v20, 0.0  ;;  %v639_v56 = vadd.f32 %v638_v21, %v637_v63  ;;  %vm599_vm4 = vcmp.ne.s32.totalorder %v598_v60, 0  ;;  %v753_v51 = vsel %vm751_vm10, 1.0, %v1165_v5 }
  0xfd   : > { %vm648_vm13 = vmor %vm646_vm7, %vm647_vm8  ;;  %v752_v12 = vsel %vm750_vm12, 1.0, %v1165_v5  ;;  %v270_v31 = vsub.f32 1.0, %v1353_v4  ;;  %vm655_vm5 = vcmask 112646   ;;  %vm595_vm6 = vcmp.ne.f32.partialorder %v533_v15, 0.0 }
  0xfe   : > { %vm652_vm2 = vmxor %vm648_vm13, %vm1634_vm11  ;;  %v640_v33 = vrot.slane %v639_v56, 1  ;;  %v755_v36 = vsel %vm754_vm0, %v752_v12, 0.0  ;;  %v757_v8 = vsel %vm756_vm15, %v753_v51, 0.0  ;;  %1013 = vlog2.f32 %v269_v38 }
  0xff   : > { %vm1649_vm1 = vmor %vm601_vm3, %vm605_vm14  ;;  %v653_v30 = vsel %vm652_vm2, 1.0, %v1165_v5  ;;  %1015 = vlog2.f32 %v270_v31  ;;  %v758_v45 = vadd.f32 %v757_v8, %v755_v36  ;;  %vm610_vm3 = vcmask 106496  }
 0x100   : > { %vm600_vm7 = vmor %vm595_vm6, %vm599_vm4  ;;  %1017 = vlog2.f32 %v1346_v1  ;;  %v656_v39 = vsel %vm655_vm5, %v653_v30, 0.0  ;;  %v641_v7 = vadd.f32 %v640_v33, %v639_v56  ;;  %vm1808_vm9 = vcmask 113664  }
 0x101   : > { %vm607_vm8 = vmxor %vm600_vm7, %vm1649_vm1  ;;  %1019 = vlog2.f32 %v1353_v4  ;;  %v759_v19 = vrot.slane %v758_v45, 4  ;;  %vm771_vm10 = vcmp.ne.f32.partialorder %v1569_v9, 0.0  ;;  %vm772_vm11 = vcmp.ne.f32.partialorder %v1441_v54, 0.0 }
 0x102   : > { %v608_v48 = vsel %vm607_vm8, 1.0, %v1165_v5  ;;  %v642_v37 = vsel %vm1808_vm9, %v641_v7, 0.0  ;;  %vm774_vm12 = vcmp.ne.f32.partialorder %v1595_v11, 0.0  ;;  %vm775_vm13 = vcmp.ne.f32.partialorder %v1464_v34, 0.0  ;;  %vm773_vm14 = vmor %vm771_vm10, %vm772_vm11 }
 0x103   : > { %v611_v28 = vsel %vm610_vm3, %v608_v48, 0.0  ;;  %v760_v49 = vadd.f32 %v759_v19, %v758_v45  ;;  %vm776_vm15 = vmor %vm774_vm12, %vm775_vm13  ;;  %vm212_vm0 = vcmask 130048   ;;  %v237_v43 = vmul.f32 %v1348_v2, %v1346_v1 }
 0x104   : > { %vm777_vm2 = vmxor %vm773_vm14, %vm776_vm15  ;;  %v213_v58 = vsel %vm212_vm0, %v1346_v1, 0.0  ;;  %v214_v59 = vsel %vm212_vm0, %v1353_v4, 0.0  ;;  %v238_v26 = vmul.f32 %v1350_v3, %v1353_v4  ;;  %v225_v61 = vsel %vm212_vm0, %v1348_v2, 0.0 }
 0x105   : > { %v761_v25 = vrot.slane %v760_v49, 2  ;;  %v778_v17 = vsel %vm777_vm2, 1.0, %v1165_v5  ;;  %v226_v62 = vsel %vm212_vm0, %v1350_v3, 0.0  ;;  %v215_v63 = vadd.f32 %v214_v59, %v213_v58 }
 0x106   : > { %v782_v11 = vrot.slane %v778_v17, 6  ;;  %v227_v44 = vadd.f32 %v226_v62, %v225_v61  ;;  %v239_v23 = vsel %vm212_vm0, %v237_v43, 0.0  ;;  %v240_v0 = vsel %vm212_vm0, %v238_v26, 0.0 }
 0x107   : > { %v762_v41 = vadd.f32 %v761_v25, %v760_v49  ;;  %v1167_v14 = vmov 1   ;;  %v216_v16 = vrot.slane %v215_v63, 4  ;;  %v241_v20 = vadd.f32 %v240_v0, %v239_v23 }
 0x108   : > { %v1014_v10 = vpop.eup %1013  ;;  %1011 = vset.pattern.permute.xlu1 %v1167_v14  ;;  %1012 = vset.pattern.permute.xlu0 %v1167_v14  ;;  %v228_v21 = vrot.slane %v227_v44, 4  ;;  %v251_v32 = vsel %vm212_vm0, %v1348_v2, -inf  ;;  %v252_v30 = vsel %vm212_vm0, %v1350_v3, -inf  ;;  %v306_v23 = vsub.f32 0.0, %v1353_v4 }
 0x109   : > { %v1016_v47 = vpop.eup %1015  ;;  %v272_v35 = vmul.f32 0.6931472, %v1014_v10  ;;  %v763_v29 = vrot.slane %v762_v41, 1  ;;  %v217_v56 = vadd.f32 %v216_v16, %v215_v63  ;;  %v242_v38 = vrot.slane %v241_v20, 4 }
 0x10a   : > { %v1018_v6 = vpop.eup %1017  ;;  %v274_v52 = vmul.f32 0.6931472, %v1016_v47  ;;  %v229_v51 = vadd.f32 %v228_v21, %v227_v44  ;;  %v1703_v44 = vsub.f32 0.0, %v1346_v1  ;;  %v379_v14 = vmul.f32 2.0, %v306_v23 }
 0x10b   : > { %v1020_v27 = vpop.eup %1019  ;;  %v264_v53 = vmul.f32 0.6931472, %v1018_v6  ;;  %v275_v24 = vmax.f32 %v272_v35, -100.0  ;;  %v764_v57 = vadd.f32 %v763_v29, %v762_v41  ;;  %v218_v33 = vrot.slane %v217_v56, 2 }
 0x10c   : > { %657 = vadd.xlane.f32.xlu0 %v656_v39  ;;  %v266_v22 = vmul.f32 0.6931472, %v1020_v27  ;;  %v276_v9 = vmax.f32 %v274_v52, -100.0  ;;  %v243_v36 = vadd.f32 %v242_v38, %v241_v20  ;;  %v253_v39 = vmax.f32 %v251_v32, %v252_v30 }
 0x10d   : > { %v267_v55 = vmax.f32 %v264_v53, -100.0  ;;  %v277_v50 = vsel %vm212_vm0, %v275_v24, 0.0  ;;  %v230_v45 = vrot.slane %v229_v51, 2  ;;  %v219_v7 = vadd.f32 %v218_v33, %v217_v56 }
 0x10e   : > { %v268_v54 = vmax.f32 %v266_v22, -100.0  ;;  %v278_v60 = vsel %vm212_vm0, %v276_v9, 0.0  ;;  %vm1809_vm4 = vcmask 1046528   ;;  %v392_v4 = vrot.slane %v1703_v44, 2 }
 0x10f   : > { %v289_v34 = vsub.f32 %v267_v55, %v275_v24  ;;  %v279_v12 = vadd.f32 %v278_v60, %v277_v50  ;;  %v231_v10 = vadd.f32 %v230_v45, %v229_v51  ;;  %v220_v49 = vrot.slane %v219_v7, 1  ;;  %vm1810_vm1 = vmmov %vm1809_vm4 }
 0x110   : > { %612 = vadd.xlane.f32.xlu0 %v611_v28  ;;  %v290_v40 = vsub.f32 %v268_v54, %v276_v9  ;;  %v244_v28 = vrot.slane %v243_v36, 2  ;;  %v384_v60 = vrot.slane %v379_v14, 1  ;;  %vm1811_vm5 = vcmask 1045504  }
 0x111   : > { %v291_v46 = vmul.f32 %v1348_v2, %v289_v34  ;;  %v280_v8 = vrot.slane %v279_v12, 4  ;;  %v232_v35 = vrot.slane %v231_v10, 1  ;;  %v221_v53 = vadd.f32 %v220_v49, %v219_v7  ;;  %vm1812_vm6 = vmmov %vm1811_vm5 }
 0x112   : > { %643 = vadd.xlane.f32.xlu1 %v642_v37  ;;  %v292_v18 = vmul.f32 %v1350_v3, %v290_v40  ;;  %v254_v37 = vrot.slane %v253_v39, 4  ;;  %v245_v6 = vadd.f32 %v244_v28, %v243_v36 }
 0x113   : > { %v293_v13 = vsel %vm212_vm0, %v291_v46, 0.0  ;;  %v281_v19 = vadd.f32 %v280_v8, %v279_v12  ;;  %v233_v9 = vadd.f32 %v232_v35, %v231_v10  ;;  %v222_v54 = vsel %vm212_vm0, %v221_v53, 0.0 }
 0x114   : > { %v294_v42 = vsel %vm212_vm0, %v292_v18, 0.0  ;;  %v255_v25 = vmax.f32 %v253_v39, %v254_v37  ;;  %v246_v22 = vrot.slane %v245_v6, 1  ;;  %v339_v46 = vsub.f32 0.0, %v1348_v2 }
 0x115   : > { %v295_v15 = vadd.f32 %v294_v42, %v293_v13  ;;  %v282_v27 = vrot.slane %v281_v19, 2  ;;  %v234_v34 = vsel %vm212_vm0, %v233_v9, 0.0  ;;  %v340_v18 = vsub.f32 0.0, %v1350_v3 }
 0x116   : > { %v256_v24 = vrot.slane %v255_v25, 2  ;;  %v247_v17 = vadd.f32 %v246_v22, %v245_v6  ;;  %v408_v0 = vmul.f32 2.0, %v339_v46  ;;  %v373_v42 = vmul.f32 2.0, %v1703_v44 }
 0x117   : > { %v296_v31 = vrot.slane %v295_v15, 4  ;;  %v283_v41 = vadd.f32 %v282_v27, %v281_v19  ;;  %v414_v13 = vmul.f32 2.0, %v340_v18  ;;  %v426_v56 = vrot.slane %v340_v18, 2 }
 0x118   : > { %v248_v43 = vsel %vm212_vm0, %v247_v17, 0.0  ;;  %v417_v20 = vrot.slane %v408_v0, 1  ;;  %v383_v2 = vrot.slane %v373_v42, 1  ;;  %v389_v8 = vadd.f32 %v384_v60, %v306_v23 }
 0x119   : > { %v297_v48 = vadd.f32 %v296_v31, %v295_v15  ;;  %v284_v29 = vrot.slane %v283_v41, 1  ;;  %v418_v50 = vrot.slane %v414_v13, 1  ;;  %v425_v15 = vrot.slane %v339_v46, 2 }
 0x11a   : > { %v385_v38 = vsel %vm1810_vm1, %v383_v2, %v384_v60  ;;  %v393_v31 = vrot.slane %v306_v23, 2  ;;  %v410_v35 = vrot.slane %v339_v46, 1  ;;  %v201_v13 = vlaneseq }
 0x11b   : > { %v298_v47 = vrot.slane %v297_v48, 2  ;;  %v419_v3 = vsel %vm1809_vm4, %v417_v20, %v418_v50  ;;  %v427_v32 = vsel %vm1811_vm5, %v425_v15, %v426_v56  ;;  %v388_v30 = vadd.f32 %v385_v38, %v1703_v44 }
 0x11c   : > { %v422_v51 = vadd.f32 %v419_v3, %v339_v46  ;;  %v423_v33 = vadd.f32 %v418_v50, %v340_v18  ;;  %v394_v36 = vsel %vm1812_vm6, %v392_v4, %v393_v31  ;;  %v398_v19 = vadd.f32 %v393_v31, %v389_v8 }
 0x11d   : > { %v299_v52 = vadd.f32 %v298_v47, %v297_v48  ;;  %v397_v28 = vadd.f32 %v394_v36, %v388_v30  ;;  %vm494_vm5 = vcmask 15368   ;;  %vm496_vm6 = vcmask 13320  }
 0x11e   : > { %v430_v39 = vadd.f32 %v427_v32, %v422_v51  ;;  %v431_v45 = vadd.f32 %v426_v56, %v423_v33  ;;  %vm463_vm13 = vcmp.ne.f32.partialorder %v398_v19, 0.0  ;;  %v412_v22 = vadd.f32 %v410_v35, %v408_v0 }
 0x11f   : > { %v300_v55 = vrot.slane %v299_v52, 1  ;;  %vm462_vm10 = vcmp.ne.f32.partialorder %v397_v28, 0.0 }
 0x120   : > { %vm476_vm7 = vcmp.ne.f32.partialorder %v430_v39, 0.0  ;;  %vm477_vm3 = vcmp.ne.f32.partialorder %v431_v45, 0.0 }
 0x121   : > { %v301_v40 = vadd.f32 %v300_v55, %v299_v52  ;;  %v375_v52 = vrot.slane %v1703_v44, 1 }
 0x123   : > { %783 = vrot.lane.b32.xlu1 %v782_v11, %s1166_s28  ;;  %v257_v11 = vmax.f32 %v255_v25, %v256_v24  ;;  %v302_v59 = vsel %vm212_vm0, %v301_v40, 0.0  ;;  %v377_v24 = vadd.f32 %v375_v52, %v373_v42  ;;  %v202_v42 = vand.u32 127, %v201_v13 }
 0x125   : > { %v258_v58 = vrot.slane %v257_v11, 1 }
 0x126   : > { %767 = vrot.lane.b32.xlu0 %v764_v57, %s1166_s28  ;;  %v285_v57 = vadd.f32 %v284_v29, %v283_v41 }
 0x127   : > { %v259_v61 = vmax.f32 %v257_v11, %v258_v58 }
 0x128   : > { %v286_v26 = vsel %vm212_vm0, %v285_v57, 0.0 }
 0x129   : > { %v260_v62 = vsel %vm212_vm0, %v259_v61, -inf }
 0x145   : > { %223 = vadd.xlane.f32.xlu0 %v222_v54 }
 0x147   : > { %235 = vadd.xlane.f32.xlu1 %v234_v34 }
 0x149   : > { %249 = vadd.xlane.f32.xlu0 %v248_v43 }
 0x14b   : > { %303 = vadd.xlane.f32.xlu1 %v302_v59 }
 0x14d   : > { %287 = vadd.xlane.f32.xlu0 %v286_v26 }
 0x150   : > { %v511_v21 = vpop.permute.xlu1 %510 }
 0x151   : > { %261 = vmax.xlane.f32.xlu0 %v260_v62 }
 0x153   : > { %v1700_v63 = vpop.permute.xlu0 %517 }
 0x154   : > { %v471_v12 = vpop.permute.xlu1 %470 }
 0x155   : > { %vm473_vm14 = vcmp.ne.s32.totalorder %v471_v12, 0  ;;  %v204_v12 = vshrl.u32 %v201_v13, 7 }
 0x156   : > { %vm475_vm4 = vmor %vm463_vm13, %vm473_vm14  ;;  %vm441_vm14 = vcmp.ne.f32.partialorder %v377_v24, 0.0 }
 0x157   : > { %v1707_v16 = vpop.permute.xlu0 %445 }
 0x158   : > { %v485_v7 = vpop.permute.xlu1 %484 }
 0x159   : > { %vm487_vm9 = vcmp.ne.s32.totalorder %v485_v7, 0 }
 0x15a   : > { %vm489_vm15 = vmor %vm477_vm3, %vm487_vm9  ;;  %vm507_vm3 = vcmp.ne.f32.partialorder %v389_v8, 0.0  ;;  %vm512_vm9 = vcmp.ne.s32.totalorder %v511_v21, 0 }
 0x15b   : > { %v469_v1 = vpop.permute.xlu0 %468  ;;  %vm491_vm1 = vmxor %vm475_vm4, %vm489_vm15  ;;  %vm447_vm15 = vcmp.ne.s32.totalorder %v1707_v16, 0 }
 0x15c   : > { %vm472_vm11 = vcmp.ne.s32.totalorder %v469_v1, 0  ;;  %v493_v10 = vsel %vm491_vm1, 1.0, %v1165_v5  ;;  %v454_v41 = vpop.permute.xlu1 %453  ;;  %vm513_vm13 = vmor %vm507_vm3, %vm512_vm9  ;;  %vm798_vm3 = vcmp.eq.s32.totalorder %v202_v42, 4  ;;  %vm801_vm9 = vcmp.eq.s32.totalorder %v202_v42, 5 }
 0x15d   : > { %vm474_vm2 = vmor %vm462_vm10, %vm472_vm11  ;;  %v497_v49 = vsel %vm496_vm6, %v493_v10, 0.0  ;;  %vm449_vm10 = vcmp.ne.f32.partialorder %v412_v22, 0.0  ;;  %vm455_vm11 = vcmp.ne.s32.totalorder %v454_v41, 0  ;;  %vm789_vm6 = vcmp.eq.s32.totalorder %v202_v42, 1 }
 0x15e   : > { %vm448_vm4 = vmor %vm441_vm14, %vm447_vm15 }
 0x15f   : > { %v483_v48 = vpop.permute.xlu0 %482 }
 0x160   : > { %vm486_vm8 = vcmp.ne.s32.totalorder %v483_v48, 0  ;;  %v735_v43 = vpop.permute.xlu1 %734 }
 0x161   : > { %vm488_vm12 = vmor %vm476_vm7, %vm486_vm8  ;;  %vm514_vm7 = vcmp.ne.f32.partialorder %v423_v33, 0.0  ;;  %vm519_vm8 = vcmp.ne.s32.totalorder %v1700_v63, 0 }
 0x162   : > { %vm490_vm0 = vmxor %vm474_vm2, %vm488_vm12 }
 0x163   : > { %v492_v37 = vsel %vm490_vm0, 1.0, %v1165_v5  ;;  %vm520_vm12 = vmor %vm514_vm7, %vm519_vm8  ;;  %vm792_vm7 = vcmp.eq.s32.totalorder %v202_v42, 2  ;;  %vm795_vm8 = vcmp.eq.s32.totalorder %v202_v42, 3 }
 0x164   : > { %v495_v47 = vsel %vm494_vm5, %v492_v37, 0.0  ;;  %vm456_vm2 = vmor %vm449_vm10, %vm455_vm11  ;;  %vm787_vm5 = vcmp.eq.s32.totalorder %v202_v42, 0  ;;  %vm809_vm10 = vcmp.eq.s32.totalorder %v202_v42, 6  ;;  %vm205_vm11 = vcmp.eq.s32.totalorder %v204_v12, 0 }
 0x165   : > { %v498_v6 = vadd.f32 %v497_v49, %v495_v47  ;;  %vm521_vm0 = vmxor %vm513_vm13, %vm520_vm12 }
 0x166   : > { %vm457_vm1 = vmxor %vm448_vm4, %vm456_vm2  ;;  %v522_v17 = vsel %vm521_vm0, 1.0, %v1165_v5 }
 0x167   : > { %v499_v27 = vrot.slane %v498_v6, 4  ;;  %v458_v29 = vsel %vm457_vm1, 1.0, %v1165_v5  ;;  %v526_v40 = vrot.slane %v522_v17, 6 }
 0x169   : > { %v500_v25 = vadd.f32 %v499_v27, %v498_v6 }
 0x16b   : > { %v501_v53 = vrot.slane %v500_v25, 2 }
 0x16d   : > { %v502_v9 = vadd.f32 %v501_v53, %v500_v25 }
 0x16f   : > { %v503_v55 = vrot.slane %v502_v9, 1 }
 0x171   : > { %v504_v54 = vadd.f32 %v503_v55, %v502_v9 }
 0x173   : > { %v506_v11 = vadd.f32 %v504_v54, %v458_v29 }
 0x175   : > { %v528_v57 = vadd.f32 %v526_v40, %v506_v11 }
 0x199   : > { %v658_v34 = vpop.xlane.xlu0 %657 }
 0x19a   : > { %v660_v61 = vrot.slane %v658_v34, 6 }
 0x19d   : > { %v613_v58 = vpop.xlane.xlu0 %612 }
 0x19e   : > { %v614_v59 = vadd.f32 %v613_v58, %v528_v57 }
 0x19f   : > { %v644_v26 = vpop.xlane.xlu1 %643 }
 0x1a0   : > { %v645_v62 = vadd.f32 %v644_v26, %v614_v59 }
 0x1a1   : > { %v768_v63 = vpop.permute.xlu0 %767 }
 0x1a2   : > { %v662_v46 = vadd.f32 %v660_v61, %v645_v62 }
 0x1a3   : > { %v784_v23 = vpop.permute.xlu1 %783 }
 0x1a4   : > { %v737_v18 = vadd.f32 %v735_v43, %v662_v46 }
 0x1a6   : > { %v770_v44 = vadd.f32 %v768_v63, %v737_v18 }
 0x1a8   : > { %v786_v0 = vadd.f32 %v784_v23, %v770_v44 }
 0x1aa   : > { %804 = vperm.xlu1 %1011, %v786_v0  }
 0x1d2   : > { %v224_v5 = vpop.xlane.xlu0 %223 }
 0x1d3   : > { %v788_v20 = vsel %vm787_vm5, %v224_v5, 0.0 }
 0x1d4   : > { %v236_v14 = vpop.xlane.xlu1 %235 }
 0x1d5   : > { %v790_v21 = vsel %vm789_vm6, %v236_v14, 0.0 }
 0x1d6   : > { %v250_v16 = vpop.xlane.xlu0 %249  ;;  %v791_v50 = vadd.f32 %v790_v21, %v788_v20 }
 0x1d7   : > { %v793_v2 = vsel %vm792_vm7, %v250_v16, 0.0 }
 0x1d8   : > { %v794_v3 = vadd.f32 %v793_v2, %v791_v50  ;;  %v304_v56 = vpop.xlane.xlu1 %303 }
 0x1d9   : > { %v799_v38 = vsel %vm798_vm3, %v304_v56, 0.0 }
 0x1da   : > { %v288_v60 = vpop.xlane.xlu0 %287 }
 0x1db   : > { %v796_v15 = vsel %vm795_vm8, %v288_v60, 0.0 }
 0x1dc   : > { %v797_v1 = vadd.f32 %v796_v15, %v794_v3 }
 0x1de   : > { %v262_v4 = vpop.xlane.xlu0 %261  ;;  %v800_v51 = vadd.f32 %v799_v38, %v797_v1 }
 0x1df   : > { %v810_v30 = vsel %vm809_vm10, %v262_v4, 0.0 }
 0x229   : > { %v805_v31 = vpop.permute.xlu1 %804 }
 0x22a   : > { %v807_v32 = vsel %vm801_vm9, %v805_v31, 0.0 }
 0x22b   : > { %v808_v33 = vadd.f32 %v807_v32, %v800_v51 }
 0x22d   : > { %v811_v36 = vadd.f32 %v810_v30, %v808_v33 }
 0x22f   : > { %v814_v8 = vsel %vm205_vm11, %v811_v36, 0.0 }
 0x230   : > { %815 = vst [vmem:[%s200_s26] sm:$0x1] %v814_v8 }
 0x231   : > { %1096 = shalt.err (!%p1093_p3)
}
 0x232   : > { %s1097_s30 = scalar_lea.hbm %s1727_s7, 16  ;;  %s1101_s3 = scalar_lea.hbm %s1773_s2, 32 }
 0x233   : > { %p1098_p12 = scmp.ne.s32.totalorder %s1727_s7, %s1097_s30  ;;  %p1102_p2 = scmp.lt.u32.totalorder %s1727_s7, %s1773_s2 }
 0x234   : > { %p1103_p4 = scmp.lt.u32.totalorder %s1101_s3, %s1097_s30  ;;  %p1105_p13 = scmp.lt.u32.totalorder %s1097_s30, %s1727_s7 }
 0x235   : > { %p1099_p8 = pnand %p1098_p12, %p1813_p1 }
 0x236   : > { %p1104_p6 = por %p1103_p4, %p1102_p2 }
 0x237   : > { %p1100_p0 = pneg %p1099_p8 }
 0x238   : > { %p1106_p11 = por %p1105_p13, %p1104_p6 }
 0x23a   : > { %p1107_p10 = pnand %p1106_p11, %p1100_p0 }
 0x23c   : > { %1110 = shalt.err (!%p1107_p10)
}
 0x23d   : > { %943 = dma.vmem_to_hbm [thread:$0]  (%p1813_p1), %s1729_s27, 16, %s1727_s7, %s817_s14  }
 0x23e PF: > { %s841_s20 = sand.u32 1, %s1141_s9   ;;  %p1814_p5 = scmp.ne.s32.totalorder %s1782_s22, 0 }
 0x23f   : > { %p1815_p7 = scmp.ge.s32.totalorder %s1153_s12, 2  ;;  %s842_s17 = scalar_lea.sflag [#allocation4], %s841_s20 }
 0x241   : > { %p953_p9 = pnand %p1815_p7, %p1814_p5 }
 0x243   : > { %1136 = dma.done.wait (!%p953_p9), %s842_s17, 16  }
 0x244   : > { %1138 = vsyncadd (!%p953_p9), %s842_s17, 4294967280  ;;  %p18_p3 = scmp.ge.s32.totalorder %s1209_s15, 4   ;;  %s1816_s9 = smov %s1145_s10 }
 0x245   : > { %s1817_s10 = smov %s1149_s11  ;;  %s1818_s11 = smov %s1221_s18 }
 0x246   : > { %s1819_s12 = smov %s1209_s15  ;;  %20 = sbr.rel (!%p18_p3) target bundleno = 7 (0x7), region = 86 }
 0x24d   :  { %846 = vsyncpa [#allocation3], 1 }
 0x24e   :  { %848 = vsyncpa [#allocation3 + $0x1], 1 }
 0x24f   :  { %849 = vsyncpa [#allocation6], 1 }
 0x250   :  { %851 = vsyncpa [#allocation6 + $0x1], 1 }
 0x251   :  { %852 = vsyncpa [#allocation4], 1 }
 0x252   :  { %854 = vsyncpa [#allocation4 + $0x1], 1 }

</bundles_post_ra>
